<compile_context>
chip_gen: v7x
topology: tpu7x:2x2x1
jax: 0.10.0
libtpu: 0.0.40
codegen_flags: <defaults>
</compile_context>

<pallas_src>
import functools

import jax
import jax.numpy as jnp
from jax.experimental import pallas as pl
from jax.experimental.pallas import tpu as pltpu


# ----------------------------------------------------------------------------
# Fused kernel: the whole GraphTripleConvNet (grid axis = layer index).
# ----------------------------------------------------------------------------
def _gconv_stack_kernel(obj_in_ref, pred_in_ref, so_oh_ref, inv_cnt_ref,
                        w1_ref, b1_ref,
                        w2s_ref, b2s_ref, w2p_ref, b2p_ref, w2o_ref, b2o_ref,
                        w3_ref, b3_ref, w4_ref, b4_ref,
                        obj_out_ref, pred_out_ref,
                        obj_st, pred_st, *, Tp):
    f32 = jnp.float32
    layer = pl.program_id(0)

    # Layer 0: load the graph state into the VMEM-resident carry buffers.
    @pl.when(layer == 0)
    def _init():
        obj_st[...] = obj_in_ref[...]
        pred_st[...] = pred_in_ref[...]

    obj = obj_st[...]                      # (Op, Dp)
    pred = pred_st[...]                    # (Tp, Dp)
    so_oh = so_oh_ref[...]                 # (2*Tp, Op)  [subject one-hots ; object one-hots]

    # Gather of BOTH edge endpoints with one MXU matmul: one_hot @ obj_vecs.
    cur_so = jnp.dot(so_oh, obj, preferred_element_type=f32)       # (2Tp, Dp)
    cur_s = cur_so[:Tp]                                            # (Tp, Dp)
    cur_o = cur_so[Tp:]                                            # (Tp, Dp)

    # net1 layer 1: Linear(3*D -> H) + ReLU on concat([s, p, o]).
    cur_t = jnp.concatenate([cur_s, pred, cur_o], axis=1)          # (Tp, 3*Dp)
    h1 = jnp.maximum(
        jnp.dot(cur_t, w1_ref[...], preferred_element_type=f32) + b1_ref[...], 0.0)

    # net1 layer 2: fused Linear(H -> 2H+Dout) + ReLU, split into lane-clean
    # blocks (s / p / o) so no unaligned lane slicing of the output.
    new_s = jnp.maximum(
        jnp.dot(h1, w2s_ref[...], preferred_element_type=f32) + b2s_ref[...], 0.0)
    new_p = jnp.maximum(
        jnp.dot(h1, w2p_ref[...], preferred_element_type=f32) + b2p_ref[...], 0.0)
    new_o = jnp.maximum(
        jnp.dot(h1, w2o_ref[...], preferred_element_type=f32) + b2o_ref[...], 0.0)

    # scatter_add pooling: pooled[obj] += new_s / new_o over incident edges
    #   == so_oh^T @ [new_s ; new_o], expressed as a transposed contraction
    #   (no transposed one-hot copy needed).
    new_so = jnp.concatenate([new_s, new_o], axis=0)               # (2Tp, Hp)
    pooled = jax.lax.dot_general(
        so_oh, new_so, dimension_numbers=(((0,), (0,)), ((), ())),
        preferred_element_type=f32)                                # (Op, Hp)
    pooled = pooled * inv_cnt_ref[...]                             # 'avg' pooling

    # net2: Linear(H -> H) + ReLU, Linear(H -> Dout) + ReLU.
    h3 = jnp.maximum(
        jnp.dot(pooled, w3_ref[...], preferred_element_type=f32) + b3_ref[...], 0.0)
    new_obj = jnp.maximum(
        jnp.dot(h3, w4_ref[...], preferred_element_type=f32) + b4_ref[...], 0.0)

    # Carry the state to the next layer (stays in VMEM).
    obj_st[...] = new_obj
    pred_st[...] = new_p

    @pl.when(layer == pl.num_programs(0) - 1)
    def _finalize():
        obj_out_ref[...] = new_obj.astype(obj_out_ref.dtype)
        pred_out_ref[...] = new_p.astype(pred_out_ref.dtype)


# ----------------------------------------------------------------------------
# Host-side wrapper: padding, weight stacking, single pallas_call.
# ----------------------------------------------------------------------------
def _round_up(x, m):
    return (x + m - 1) // m * m


def _pad2(x, rows, cols):
    x = x.astype(jnp.float32)
    return jnp.pad(x, ((0, rows - x.shape[0]), (0, cols - x.shape[1])))


def graph_triple_conv_net(obj_vecs, pred_vecs, edges, params_list):
    """GraphTripleConvNet.forward: all layers fused in a single Pallas kernel."""
    O, Din = obj_vecs.shape
    T = pred_vecs.shape[0]
    L = len(params_list)
    H = params_list[0]["w3"].shape[0]
    Dout = params_list[0]["w4"].shape[1]
    assert Dout == Din, "GraphTripleConvNet uses output_dim=None -> input_dim"

    LANE, SUB = 128, 8
    Dp = _round_up(Din, LANE)     # padded feature dim (lane-dense)
    Hp = _round_up(H, LANE)       # padded hidden dim
    Op = _round_up(O, SUB)        # padded object rows (sublanes)
    Tp = _round_up(T, SUB)        # padded triple rows

    # ---- graph-static tensors (built once, DMA'd into VMEM once) ----------
    s_idx = edges[:, 0]
    o_idx = edges[:, 1]
    s_oh = jax.nn.one_hot(s_idx, Op, dtype=jnp.float32)            # (T, Op)
    o_oh = jax.nn.one_hot(o_idx, Op, dtype=jnp.float32)            # (T, Op)
    so_oh = jnp.zeros((2 * Tp, Op), jnp.float32)
    so_oh = so_oh.at[:T].set(s_oh).at[Tp:Tp + T].set(o_oh)         # (2Tp, Op)

    counts = jnp.zeros((Op,), jnp.float32).at[s_idx].add(1.0).at[o_idx].add(1.0)
    inv_cnt = (1.0 / jnp.maximum(counts, 1.0)).reshape(Op, 1)      # (Op, 1)

    obj_p = _pad2(obj_vecs, Op, Dp)                                # (Op, Dp)
    pred_p = _pad2(pred_vecs, Tp, Dp)                              # (Tp, Dp)

    # ---- pad + stack per-layer weights along a leading layer axis ---------
    def pad_layer(p):
        w1 = p["w1"].astype(jnp.float32)                           # (3Din, H)
        w1p = jnp.zeros((3 * Dp, Hp), jnp.float32)
        w1p = w1p.at[0:Din, :H].set(w1[0:Din])
        w1p = w1p.at[Dp:Dp + Din, :H].set(w1[Din:2 * Din])
        w1p = w1p.at[2 * Dp:2 * Dp + Din, :H].set(w1[2 * Din:3 * Din])
        w2, b2 = p["w2"], p["b2"]                                  # (H, 2H+Dout)
        return dict(
            w1=w1p, b1=_pad2(p["b1"], 1, Hp),
            w2s=_pad2(w2[:, :H], Hp, Hp), b2s=_pad2(b2[:, :H], 1, Hp),
            w2p=_pad2(w2[:, H:H + Dout], Hp, Dp), b2p=_pad2(b2[:, H:H + Dout], 1, Dp),
            w2o=_pad2(w2[:, H + Dout:], Hp, Hp), b2o=_pad2(b2[:, H + Dout:], 1, Hp),
            w3=_pad2(p["w3"], Hp, Hp), b3=_pad2(p["b3"], 1, Hp),
            w4=_pad2(p["w4"], Hp, Dp), b4=_pad2(p["b4"], 1, Dp),
        )

    padded = [pad_layer(p) for p in params_list]
    names = ["w1", "b1", "w2s", "b2s", "w2p", "b2p", "w2o", "b2o",
             "w3", "b3", "w4", "b4"]
    stacked = {k: jnp.stack([pl_[k] for pl_ in padded], axis=0) for k in names}

    # ---- BlockSpecs --------------------------------------------------------
    def const_spec(shape):                  # DMA'd once (index never changes)
        n = len(shape)
        return pl.BlockSpec(shape, lambda l, _n=n: (0,) * _n)

    def layer_spec(shape):                  # streamed per layer, squeezed lead dim
        return pl.BlockSpec((None,) + shape, lambda l: (l, 0, 0))

    in_specs = [
        const_spec((Op, Dp)), const_spec((Tp, Dp)),
        const_spec((2 * Tp, Op)), const_spec((Op, 1)),
        layer_spec((3 * Dp, Hp)), layer_spec((1, Hp)),
        layer_spec((Hp, Hp)), layer_spec((1, Hp)),
        layer_spec((Hp, Dp)), layer_spec((1, Dp)),
        layer_spec((Hp, Hp)), layer_spec((1, Hp)),
        layer_spec((Hp, Hp)), layer_spec((1, Hp)),
        layer_spec((Hp, Dp)), layer_spec((1, Dp)),
    ]
    out_specs = (pl.BlockSpec((Op, Dp), lambda l: (0, 0)),
                 pl.BlockSpec((Tp, Dp), lambda l: (0, 0)))

    # ---- cost estimate (advisory) ------------------------------------------
    flops_per_layer = 2 * (
        (2 * Tp) * Op * Dp            # gather
        + Tp * (3 * Dp) * Hp          # net1 layer 1
        + Tp * Hp * (2 * Hp + Dp)     # net1 layer 2 (s/p/o)
        + Op * (2 * Tp) * Hp          # scatter pooling
        + Op * Hp * Hp                # net2 layer 1
        + Op * Hp * Dp                # net2 layer 2
    )
    in_bytes = 4 * (Op * Dp + Tp * Dp + 2 * Tp * Op + Op)
    w_bytes = 4 * sum(int(v.size) for v in stacked.values())
    out_bytes = 4 * (Op * Dp + Tp * Dp)
    cost = pl.CostEstimate(flops=int(L * flops_per_layer), transcendentals=0,
                           bytes_accessed=int(in_bytes + w_bytes + out_bytes))

    kernel = functools.partial(_gconv_stack_kernel, Tp=Tp)

    new_obj_p, new_pred_p = pl.pallas_call(
        kernel,
        grid=(L,),
        in_specs=in_specs,
        out_specs=out_specs,
        out_shape=(jax.ShapeDtypeStruct((Op, Dp), jnp.float32),
                   jax.ShapeDtypeStruct((Tp, Dp), jnp.float32)),
        scratch_shapes=[pltpu.VMEM((Op, Dp), jnp.float32),     # obj state carry
                        pltpu.VMEM((Tp, Dp), jnp.float32)],    # pred state carry
        compiler_params=pltpu.CompilerParams(
            dimension_semantics=("arbitrary",)),               # layers are sequential
        cost_estimate=cost,
    )(obj_p, pred_p, so_oh, inv_cnt,
      stacked["w1"], stacked["b1"],
      stacked["w2s"], stacked["b2s"], stacked["w2p"], stacked["b2p"],
      stacked["w2o"], stacked["b2o"],
      stacked["w3"], stacked["b3"], stacked["w4"], stacked["b4"])

    # Strip the lane/sublane padding.
    return new_obj_p[:O, :Dout], new_pred_p[:T, :Dout]


# ----------------------------------------------------------------------------
# Parameter construction (deterministic, kaiming-style, torch-layout shapes)
# ----------------------------------------------------------------------------
def init_gconv_params(key, input_dim, hidden_dim):
    Din, H, Dout = input_dim, hidden_dim, input_dim   # output_dim=None -> input_dim
    ks = jax.random.split(key, 4)

    def kaiming(k, fan_in, fan_out):
        return (jax.random.normal(k, (fan_in, fan_out), jnp.float32)
                * jnp.sqrt(2.0 / fan_in))

    return dict(
        w1=kaiming(ks[0], 3 * Din, H), b1=jnp.zeros((1, H), jnp.float32),
        w2=kaiming(ks[1], H, 2 * H + Dout), b2=jnp.zeros((1, 2 * H + Dout), jnp.float32),
        w3=kaiming(ks[2], H, H), b3=jnp.zeros((1, H), jnp.float32),
        w4=kaiming(ks[3], H, Dout), b4=jnp.zeros((1, Dout), jnp.float32),
    )


# ----------------------------------------------------------------------------
# Pure-JAX reference (mirrors the PyTorch forward) for correctness check
# ----------------------------------------------------------------------------
def _ref_layer(obj, pred, s_idx, o_idx, p, H, Dout):
    cur_s = obj[s_idx]
    cur_o = obj[o_idx]
    t = jnp.concatenate([cur_s, pred, cur_o], axis=1)
    h1 = jax.nn.relu(t @ p["w1"] + p["b1"])
    t2 = jax.nn.relu(h1 @ p["w2"] + p["b2"])
    new_s, new_p, new_o = t2[:, :H], t2[:, H:H + Dout], t2[:, H + Dout:]
    O = obj.shape[0]
    pooled = jnp.zeros((O, H), jnp.float32).at[s_idx].add(new_s).at[o_idx].add(new_o)
    counts = jnp.zeros((O,), jnp.float32).at[s_idx].add(1.0).at[o_idx].add(1.0)
    counts = jnp.maximum(counts, 1.0)
    pooled = pooled / counts[:, None]
    h3 = jax.nn.relu(pooled @ p["w3"] + p["b3"])
    new_obj = jax.nn.relu(h3 @ p["w4"] + p["b4"])
    return new_obj, new_p


def _ref_net(obj, pred, edges, params_list, H, Dout):
    s_idx, o_idx = edges[:, 0], edges[:, 1]
    for p in params_list:
        obj, pred = _ref_layer(obj, pred, s_idx, o_idx, p, H, Dout)
    return obj, pred


# ----------------------------------------------------------------------------
if __name__ == "__main__":
    # Small shapes: O objects, T triples (edges), Din features, H hidden.
    O, T, Din, H = 8, 16, 32, 64
    NUM_LAYERS = 2

    key = jax.random.PRNGKey(0)
    k_obj, k_pred, k_edge, k_param = jax.random.split(key, 4)

    obj_vecs = jax.random.normal(k_obj, (O, Din), jnp.float32)
    pred_vecs = jax.random.normal(k_pred, (T, Din), jnp.float32)
    edges = jax.random.randint(k_edge, (T, 2), 0, O, jnp.int32)

    layer_keys = jax.random.split(k_param, NUM_LAYERS)
    params_list = [init_gconv_params(k, Din, H) for k in layer_keys]

    new_obj, new_pred = graph_triple_conv_net(obj_vecs, pred_vecs, edges, params_list)
    new_obj = jax.block_until_ready(new_obj)
    new_pred = jax.block_until_ready(new_pred)

    ref_obj, ref_pred = _ref_net(obj_vecs, pred_vecs, edges, params_list, H, Din)
    assert new_obj.shape == (O, Din) and new_pred.shape == (T, Din)
    assert jnp.allclose(new_obj, ref_obj, rtol=1e-4, atol=1e-4)
    assert jnp.allclose(new_pred, ref_pred, rtol=1e-4, atol=1e-4)

    print("KERNEL_OK")
</pallas_src>

<mosaic_0001>
module attributes {stable_mosaic.version = 11 : i64} {
  func.func @_gconv_stack_kernel(%arg0: i32, %arg1: memref<8x128xf32, #tpu.memory_space<vmem>>, %arg2: memref<16x128xf32, #tpu.memory_space<vmem>>, %arg3: memref<32x8xf32, #tpu.memory_space<vmem>>, %arg4: memref<8x1xf32, #tpu.memory_space<vmem>>, %arg5: memref<1x384x128xf32, #tpu.memory_space<vmem>>, %arg6: memref<1x1x128xf32, #tpu.memory_space<vmem>>, %arg7: memref<1x128x128xf32, #tpu.memory_space<vmem>>, %arg8: memref<1x1x128xf32, #tpu.memory_space<vmem>>, %arg9: memref<1x128x128xf32, #tpu.memory_space<vmem>>, %arg10: memref<1x1x128xf32, #tpu.memory_space<vmem>>, %arg11: memref<1x128x128xf32, #tpu.memory_space<vmem>>, %arg12: memref<1x1x128xf32, #tpu.memory_space<vmem>>, %arg13: memref<1x128x128xf32, #tpu.memory_space<vmem>>, %arg14: memref<1x1x128xf32, #tpu.memory_space<vmem>>, %arg15: memref<1x128x128xf32, #tpu.memory_space<vmem>>, %arg16: memref<1x1x128xf32, #tpu.memory_space<vmem>>, %arg17: memref<8x128xf32, #tpu.memory_space<vmem>>, %arg18: memref<16x128xf32, #tpu.memory_space<vmem>>, %arg19: memref<8x128xf32, #tpu.memory_space<vmem>>, %arg20: memref<16x128xf32, #tpu.memory_space<vmem>>) attributes {dimension_semantics = [#tpu.dimension_semantics<arbitrary>], iteration_bounds = array<i64: 2>, scalar_prefetch = 0 : i64, scratch_operands = 2 : i64, tpu.core_type = #tpu.core_type<tc>, window_params = [{pipeline_mode = #tpu.pipeline_mode<synchronous>, transform_indices = @transform_0, window_bounds = array<i64: 8, 128>}, {pipeline_mode = #tpu.pipeline_mode<synchronous>, transform_indices = @transform_1, window_bounds = array<i64: 16, 128>}, {pipeline_mode = #tpu.pipeline_mode<synchronous>, transform_indices = @transform_2, window_bounds = array<i64: 32, 8>}, {pipeline_mode = #tpu.pipeline_mode<synchronous>, transform_indices = @transform_3, window_bounds = array<i64: 8, 1>}, {transform_indices = @transform_4, window_bounds = array<i64: 1, 384, 128>}, {transform_indices = @transform_5, window_bounds = array<i64: 1, 1, 128>}, {transform_indices = @transform_6, window_bounds = array<i64: 1, 128, 128>}, {transform_indices = @transform_7, window_bounds = array<i64: 1, 1, 128>}, {transform_indices = @transform_8, window_bounds = array<i64: 1, 128, 128>}, {transform_indices = @transform_9, window_bounds = array<i64: 1, 1, 128>}, {transform_indices = @transform_10, window_bounds = array<i64: 1, 128, 128>}, {transform_indices = @transform_11, window_bounds = array<i64: 1, 1, 128>}, {transform_indices = @transform_12, window_bounds = array<i64: 1, 128, 128>}, {transform_indices = @transform_13, window_bounds = array<i64: 1, 1, 128>}, {transform_indices = @transform_14, window_bounds = array<i64: 1, 128, 128>}, {transform_indices = @transform_15, window_bounds = array<i64: 1, 1, 128>}, {pipeline_mode = #tpu.pipeline_mode<synchronous>, transform_indices = @transform_16, window_bounds = array<i64: 8, 128>}, {pipeline_mode = #tpu.pipeline_mode<synchronous>, transform_indices = @transform_17, window_bounds = array<i64: 16, 128>}]} {
    %c0_i32 = arith.constant 0 : i32
    %0 = arith.cmpi eq, %arg0, %c0_i32 : i32
    %1 = arith.extui %0 : i1 to i32
    %c0_i32_0 = arith.constant 0 : i32
    %2 = arith.cmpi ne, %1, %c0_i32_0 : i32
    scf.if %2 {
      %c0_62 = arith.constant 0 : index
      %c0_63 = arith.constant 0 : index
      %74 = vector.load %arg1[%c0_62, %c0_63] : memref<8x128xf32, #tpu.memory_space<vmem>>, vector<8x128xf32>
      %c0_64 = arith.constant 0 : index
      %c0_65 = arith.constant 0 : index
      %75 = vector.load %arg19[%c0_64, %c0_65] : memref<8x128xf32, #tpu.memory_space<vmem>>, vector<8x128xf32>
      tpu.vector_store %arg19[%c0_64, %c0_65], %74 {strides = array<i32>} : memref<8x128xf32, #tpu.memory_space<vmem>>, vector<8x128xf32>,
      %c0_66 = arith.constant 0 : index
      %c0_67 = arith.constant 0 : index
      %76 = vector.load %arg2[%c0_66, %c0_67] : memref<16x128xf32, #tpu.memory_space<vmem>>, vector<16x128xf32>
      %c0_68 = arith.constant 0 : index
      %c0_69 = arith.constant 0 : index
      %77 = vector.load %arg20[%c0_68, %c0_69] : memref<16x128xf32, #tpu.memory_space<vmem>>, vector<16x128xf32>
      tpu.vector_store %arg20[%c0_68, %c0_69], %76 {strides = array<i32>} : memref<16x128xf32, #tpu.memory_space<vmem>>, vector<16x128xf32>,
    } else {
    }
    %c0 = arith.constant 0 : index
    %c0_1 = arith.constant 0 : index
    %3 = vector.load %arg19[%c0, %c0_1] : memref<8x128xf32, #tpu.memory_space<vmem>>, vector<8x128xf32>
    %c0_2 = arith.constant 0 : index
    %c0_3 = arith.constant 0 : index
    %4 = vector.load %arg20[%c0_2, %c0_3] : memref<16x128xf32, #tpu.memory_space<vmem>>, vector<16x128xf32>
    %c0_4 = arith.constant 0 : index
    %c0_5 = arith.constant 0 : index
    %5 = vector.load %arg3[%c0_4, %c0_5] : memref<32x8xf32, #tpu.memory_space<vmem>>, vector<32x8xf32>
    %cst = arith.constant dense<0.000000e+00> : vector<32x128xf32>
    %6 = tpu.matmul %5, %3, %cst {dimension_numbers = #tpu.dot_dimension_numbers<[1], [0], [0], [1], [0, 0, 1, 1], [], []>} : vector<32x8xf32>, vector<8x128xf32>, vector<32x128xf32> -> vector<32x128xf32>
    %7 = vector.extract_strided_slice %6 {offsets = [0, 0], sizes = [16, 128], strides = [1, 1]} : vector<32x128xf32> to vector<16x128xf32>
    %8 = vector.extract_strided_slice %6 {offsets = [16, 0], sizes = [16, 128], strides = [1, 1]} : vector<32x128xf32> to vector<16x128xf32>
    %9 = tpu.concatenate %7, %4, %8 in 1 : vector<16x128xf32>, vector<16x128xf32>, vector<16x128xf32> -> vector<16x384xf32>
    %c0_6 = arith.constant 0 : index
    %c0_7 = arith.constant 0 : index
    %c0_8 = arith.constant 0 : index
    %10 = vector.load %arg5[%c0_6, %c0_7, %c0_8] : memref<1x384x128xf32, #tpu.memory_space<vmem>>, vector<1x384x128xf32>
    %11 = vector.shape_cast %10 : vector<1x384x128xf32> to vector<384x128xf32>
    %cst_9 = arith.constant dense<0.000000e+00> : vector<16x128xf32>
    %12 = tpu.matmul %9, %11, %cst_9 {dimension_numbers = #tpu.dot_dimension_numbers<[1], [0], [0], [1], [0, 0, 1, 1], [], []>} : vector<16x384xf32>, vector<384x128xf32>, vector<16x128xf32> -> vector<16x128xf32>
    %c0_10 = arith.constant 0 : index
    %c0_11 = arith.constant 0 : index
    %c0_12 = arith.constant 0 : index
    %13 = vector.load %arg6[%c0_10, %c0_11, %c0_12] : memref<1x1x128xf32, #tpu.memory_space<vmem>>, vector<1x1x128xf32>
    %14 = vector.shape_cast %13 : vector<1x1x128xf32> to vector<1x128xf32>
    %15 = vector.broadcast %14 : vector<1x128xf32> to vector<16x128xf32>
    %16 = arith.addf %12, %15 : vector<16x128xf32>
    %cst_13 = arith.constant 0.000000e+00 : f32
    %17 = vector.broadcast %cst_13 : f32 to vector<16x128xf32>
    %18 = arith.maximumf %16, %17 : vector<16x128xf32>
    %c0_14 = arith.constant 0 : index
    %c0_15 = arith.constant 0 : index
    %c0_16 = arith.constant 0 : index
    %19 = vector.load %arg7[%c0_14, %c0_15, %c0_16] : memref<1x128x128xf32, #tpu.memory_space<vmem>>, vector<1x128x128xf32>
    %20 = vector.shape_cast %19 : vector<1x128x128xf32> to vector<128x128xf32>
    %cst_17 = arith.constant dense<0.000000e+00> : vector<16x128xf32>
    %21 = tpu.matmul %18, %20, %cst_17 {dimension_numbers = #tpu.dot_dimension_numbers<[1], [0], [0], [1], [0, 0, 1, 1], [], []>} : vector<16x128xf32>, vector<128x128xf32>, vector<16x128xf32> -> vector<16x128xf32>
    %c0_18 = arith.constant 0 : index
    %c0_19 = arith.constant 0 : index
    %c0_20 = arith.constant 0 : index
    %22 = vector.load %arg8[%c0_18, %c0_19, %c0_20] : memref<1x1x128xf32, #tpu.memory_space<vmem>>, vector<1x1x128xf32>
    %23 = vector.shape_cast %22 : vector<1x1x128xf32> to vector<1x128xf32>
    %24 = vector.broadcast %23 : vector<1x128xf32> to vector<16x128xf32>
    %25 = arith.addf %21, %24 : vector<16x128xf32>
    %cst_21 = arith.constant 0.000000e+00 : f32
    %26 = vector.broadcast %cst_21 : f32 to vector<16x128xf32>
    %27 = arith.maximumf %25, %26 : vector<16x128xf32>
    %c0_22 = arith.constant 0 : index
    %c0_23 = arith.constant 0 : index
    %c0_24 = arith.constant 0 : index
    %28 = vector.load %arg9[%c0_22, %c0_23, %c0_24] : memref<1x128x128xf32, #tpu.memory_space<vmem>>, vector<1x128x128xf32>
    %29 = vector.shape_cast %28 : vector<1x128x128xf32> to vector<128x128xf32>
    %cst_25 = arith.constant dense<0.000000e+00> : vector<16x128xf32>
    %30 = tpu.matmul %18, %29, %cst_25 {dimension_numbers = #tpu.dot_dimension_numbers<[1], [0], [0], [1], [0, 0, 1, 1], [], []>} : vector<16x128xf32>, vector<128x128xf32>, vector<16x128xf32> -> vector<16x128xf32>
    %c0_26 = arith.constant 0 : index
    %c0_27 = arith.constant 0 : index
    %c0_28 = arith.constant 0 : index
    %31 = vector.load %arg10[%c0_26, %c0_27, %c0_28] : memref<1x1x128xf32, #tpu.memory_space<vmem>>, vector<1x1x128xf32>
    %32 = vector.shape_cast %31 : vector<1x1x128xf32> to vector<1x128xf32>
    %33 = vector.broadcast %32 : vector<1x128xf32> to vector<16x128xf32>
    %34 = arith.addf %30, %33 : vector<16x128xf32>
    %cst_29 = arith.constant 0.000000e+00 : f32
    %35 = vector.broadcast %cst_29 : f32 to vector<16x128xf32>
    %36 = arith.maximumf %34, %35 : vector<16x128xf32>
    %c0_30 = arith.constant 0 : index
    %c0_31 = arith.constant 0 : index
    %c0_32 = arith.constant 0 : index
    %37 = vector.load %arg11[%c0_30, %c0_31, %c0_32] : memref<1x128x128xf32, #tpu.memory_space<vmem>>, vector<1x128x128xf32>
    %38 = vector.shape_cast %37 : vector<1x128x128xf32> to vector<128x128xf32>
    %cst_33 = arith.constant dense<0.000000e+00> : vector<16x128xf32>
    %39 = tpu.matmul %18, %38, %cst_33 {dimension_numbers = #tpu.dot_dimension_numbers<[1], [0], [0], [1], [0, 0, 1, 1], [], []>} : vector<16x128xf32>, vector<128x128xf32>, vector<16x128xf32> -> vector<16x128xf32>
    %c0_34 = arith.constant 0 : index
    %c0_35 = arith.constant 0 : index
    %c0_36 = arith.constant 0 : index
    %40 = vector.load %arg12[%c0_34, %c0_35, %c0_36] : memref<1x1x128xf32, #tpu.memory_space<vmem>>, vector<1x1x128xf32>
    %41 = vector.shape_cast %40 : vector<1x1x128xf32> to vector<1x128xf32>
    %42 = vector.broadcast %41 : vector<1x128xf32> to vector<16x128xf32>
    %43 = arith.addf %39, %42 : vector<16x128xf32>
    %cst_37 = arith.constant 0.000000e+00 : f32
    %44 = vector.broadcast %cst_37 : f32 to vector<16x128xf32>
    %45 = arith.maximumf %43, %44 : vector<16x128xf32>
    %46 = tpu.concatenate %27, %45 in 0 : vector<16x128xf32>, vector<16x128xf32> -> vector<32x128xf32>
    %cst_38 = arith.constant dense<0.000000e+00> : vector<8x128xf32>
    %47 = tpu.matmul %5, %46, %cst_38 {dimension_numbers = #tpu.dot_dimension_numbers<[0], [0], [1], [1], [0, 1, 1, 1], [], []>} : vector<32x8xf32>, vector<32x128xf32>, vector<8x128xf32> -> vector<8x128xf32>
    %c0_39 = arith.constant 0 : index
    %c0_40 = arith.constant 0 : index
    %48 = vector.load %arg4[%c0_39, %c0_40] : memref<8x1xf32, #tpu.memory_space<vmem>>, vector<8x1xf32>
    %49 = vector.broadcast %48 : vector<8x1xf32> to vector<8x128xf32>
    %50 = arith.mulf %47, %49 : vector<8x128xf32>
    %c0_41 = arith.constant 0 : index
    %c0_42 = arith.constant 0 : index
    %c0_43 = arith.constant 0 : index
    %51 = vector.load %arg13[%c0_41, %c0_42, %c0_43] : memref<1x128x128xf32, #tpu.memory_space<vmem>>, vector<1x128x128xf32>
    %52 = vector.shape_cast %51 : vector<1x128x128xf32> to vector<128x128xf32>
    %cst_44 = arith.constant dense<0.000000e+00> : vector<8x128xf32>
    %53 = tpu.matmul %50, %52, %cst_44 {dimension_numbers = #tpu.dot_dimension_numbers<[1], [0], [0], [1], [0, 0, 1, 1], [], []>} : vector<8x128xf32>, vector<128x128xf32>, vector<8x128xf32> -> vector<8x128xf32>
    %c0_45 = arith.constant 0 : index
    %c0_46 = arith.constant 0 : index
    %c0_47 = arith.constant 0 : index
    %54 = vector.load %arg14[%c0_45, %c0_46, %c0_47] : memref<1x1x128xf32, #tpu.memory_space<vmem>>, vector<1x1x128xf32>
    %55 = vector.shape_cast %54 : vector<1x1x128xf32> to vector<1x128xf32>
    %56 = vector.broadcast %55 : vector<1x128xf32> to vector<8x128xf32>
    %57 = arith.addf %53, %56 : vector<8x128xf32>
    %cst_48 = arith.constant 0.000000e+00 : f32
    %58 = vector.broadcast %cst_48 : f32 to vector<8x128xf32>
    %59 = arith.maximumf %57, %58 : vector<8x128xf32>
    %c0_49 = arith.constant 0 : index
    %c0_50 = arith.constant 0 : index
    %c0_51 = arith.constant 0 : index
    %60 = vector.load %arg15[%c0_49, %c0_50, %c0_51] : memref<1x128x128xf32, #tpu.memory_space<vmem>>, vector<1x128x128xf32>
    %61 = vector.shape_cast %60 : vector<1x128x128xf32> to vector<128x128xf32>
    %cst_52 = arith.constant dense<0.000000e+00> : vector<8x128xf32>
    %62 = tpu.matmul %59, %61, %cst_52 {dimension_numbers = #tpu.dot_dimension_numbers<[1], [0], [0], [1], [0, 0, 1, 1], [], []>} : vector<8x128xf32>, vector<128x128xf32>, vector<8x128xf32> -> vector<8x128xf32>
    %c0_53 = arith.constant 0 : index
    %c0_54 = arith.constant 0 : index
    %c0_55 = arith.constant 0 : index
    %63 = vector.load %arg16[%c0_53, %c0_54, %c0_55] : memref<1x1x128xf32, #tpu.memory_space<vmem>>, vector<1x1x128xf32>
    %64 = vector.shape_cast %63 : vector<1x1x128xf32> to vector<1x128xf32>
    %65 = vector.broadcast %64 : vector<1x128xf32> to vector<8x128xf32>
    %66 = arith.addf %62, %65 : vector<8x128xf32>
    %cst_56 = arith.constant 0.000000e+00 : f32
    %67 = vector.broadcast %cst_56 : f32 to vector<8x128xf32>
    %68 = arith.maximumf %66, %67 : vector<8x128xf32>
    %c0_57 = arith.constant 0 : index
    %c0_58 = arith.constant 0 : index
    %69 = vector.load %arg19[%c0_57, %c0_58] : memref<8x128xf32, #tpu.memory_space<vmem>>, vector<8x128xf32>
    tpu.vector_store %arg19[%c0_57, %c0_58], %68 {strides = array<i32>} : memref<8x128xf32, #tpu.memory_space<vmem>>, vector<8x128xf32>,
    %c0_59 = arith.constant 0 : index
    %c0_60 = arith.constant 0 : index
    %70 = vector.load %arg20[%c0_59, %c0_60] : memref<16x128xf32, #tpu.memory_space<vmem>>, vector<16x128xf32>
    tpu.vector_store %arg20[%c0_59, %c0_60], %36 {strides = array<i32>} : memref<16x128xf32, #tpu.memory_space<vmem>>, vector<16x128xf32>,
    %c1_i32 = arith.constant 1 : i32
    %71 = arith.cmpi eq, %arg0, %c1_i32 : i32
    %72 = arith.extui %71 : i1 to i32
    %c0_i32_61 = arith.constant 0 : i32
    %73 = arith.cmpi ne, %72, %c0_i32_61 : i32
    scf.if %73 {
      %c0_62 = arith.constant 0 : index
      %c0_63 = arith.constant 0 : index
      %74 = vector.load %arg17[%c0_62, %c0_63] : memref<8x128xf32, #tpu.memory_space<vmem>>, vector<8x128xf32>
      tpu.vector_store %arg17[%c0_62, %c0_63], %68 {strides = array<i32>} : memref<8x128xf32, #tpu.memory_space<vmem>>, vector<8x128xf32>,
      %c0_64 = arith.constant 0 : index
      %c0_65 = arith.constant 0 : index
      %75 = vector.load %arg18[%c0_64, %c0_65] : memref<16x128xf32, #tpu.memory_space<vmem>>, vector<16x128xf32>
      tpu.vector_store %arg18[%c0_64, %c0_65], %36 {strides = array<i32>} : memref<16x128xf32, #tpu.memory_space<vmem>>, vector<16x128xf32>,
    } else {
    }
    return
  }
  func.func @transform_0(%arg0: i32) -> (i32, i32) {
    %c0_i32 = arith.constant 0 : i32
    %c0_i32_0 = arith.constant 0 : i32
    %c0_i32_1 = arith.constant 0 : i32
    return %c0_i32, %c0_i32_0 : i32, i32
  }
  func.func @transform_1(%arg0: i32) -> (i32, i32) {
    %c0_i32 = arith.constant 0 : i32
    %c0_i32_0 = arith.constant 0 : i32
    %c0_i32_1 = arith.constant 0 : i32
    return %c0_i32, %c0_i32_0 : i32, i32
  }
  func.func @transform_2(%arg0: i32) -> (i32, i32) {
    %c0_i32 = arith.constant 0 : i32
    %c0_i32_0 = arith.constant 0 : i32
    %c0_i32_1 = arith.constant 0 : i32
    return %c0_i32, %c0_i32_0 : i32, i32
  }
  func.func @transform_3(%arg0: i32) -> (i32, i32) {
    %c0_i32 = arith.constant 0 : i32
    %c0_i32_0 = arith.constant 0 : i32
    %c0_i32_1 = arith.constant 0 : i32
    return %c0_i32, %c0_i32_0 : i32, i32
  }
  func.func @transform_4(%arg0: i32) -> (i32, i32, i32) {
    %c0_i32 = arith.constant 0 : i32
    %c0_i32_0 = arith.constant 0 : i32
    %c0_i32_1 = arith.constant 0 : i32
    return %arg0, %c0_i32, %c0_i32_0 : i32, i32, i32
  }
  func.func @transform_5(%arg0: i32) -> (i32, i32, i32) {
    %c0_i32 = arith.constant 0 : i32
    %c0_i32_0 = arith.constant 0 : i32
    %c0_i32_1 = arith.constant 0 : i32
    return %arg0, %c0_i32, %c0_i32_0 : i32, i32, i32
  }
  func.func @transform_6(%arg0: i32) -> (i32, i32, i32) {
    %c0_i32 = arith.constant 0 : i32
    %c0_i32_0 = arith.constant 0 : i32
    %c0_i32_1 = arith.constant 0 : i32
    return %arg0, %c0_i32, %c0_i32_0 : i32, i32, i32
  }
  func.func @transform_7(%arg0: i32) -> (i32, i32, i32) {
    %c0_i32 = arith.constant 0 : i32
    %c0_i32_0 = arith.constant 0 : i32
    %c0_i32_1 = arith.constant 0 : i32
    return %arg0, %c0_i32, %c0_i32_0 : i32, i32, i32
  }
  func.func @transform_8(%arg0: i32) -> (i32, i32, i32) {
    %c0_i32 = arith.constant 0 : i32
    %c0_i32_0 = arith.constant 0 : i32
    %c0_i32_1 = arith.constant 0 : i32
    return %arg0, %c0_i32, %c0_i32_0 : i32, i32, i32
  }
  func.func @transform_9(%arg0: i32) -> (i32, i32, i32) {
    %c0_i32 = arith.constant 0 : i32
    %c0_i32_0 = arith.constant 0 : i32
    %c0_i32_1 = arith.constant 0 : i32
    return %arg0, %c0_i32, %c0_i32_0 : i32, i32, i32
  }
  func.func @transform_10(%arg0: i32) -> (i32, i32, i32) {
    %c0_i32 = arith.constant 0 : i32
    %c0_i32_0 = arith.constant 0 : i32
    %c0_i32_1 = arith.constant 0 : i32
    return %arg0, %c0_i32, %c0_i32_0 : i32, i32, i32
  }
  func.func @transform_11(%arg0: i32) -> (i32, i32, i32) {
    %c0_i32 = arith.constant 0 : i32
    %c0_i32_0 = arith.constant 0 : i32
    %c0_i32_1 = arith.constant 0 : i32
    return %arg0, %c0_i32, %c0_i32_0 : i32, i32, i32
  }
  func.func @transform_12(%arg0: i32) -> (i32, i32, i32) {
    %c0_i32 = arith.constant 0 : i32
    %c0_i32_0 = arith.constant 0 : i32
    %c0_i32_1 = arith.constant 0 : i32
    return %arg0, %c0_i32, %c0_i32_0 : i32, i32, i32
  }
  func.func @transform_13(%arg0: i32) -> (i32, i32, i32) {
    %c0_i32 = arith.constant 0 : i32
    %c0_i32_0 = arith.constant 0 : i32
    %c0_i32_1 = arith.constant 0 : i32
    return %arg0, %c0_i32, %c0_i32_0 : i32, i32, i32
  }
  func.func @transform_14(%arg0: i32) -> (i32, i32, i32) {
    %c0_i32 = arith.constant 0 : i32
    %c0_i32_0 = arith.constant 0 : i32
    %c0_i32_1 = arith.constant 0 : i32
    return %arg0, %c0_i32, %c0_i32_0 : i32, i32, i32
  }
  func.func @transform_15(%arg0: i32) -> (i32, i32, i32) {
    %c0_i32 = arith.constant 0 : i32
    %c0_i32_0 = arith.constant 0 : i32
    %c0_i32_1 = arith.constant 0 : i32
    return %arg0, %c0_i32, %c0_i32_0 : i32, i32, i32
  }
  func.func @transform_16(%arg0: i32) -> (i32, i32) {
    %c0_i32 = arith.constant 0 : i32
    %c0_i32_0 = arith.constant 0 : i32
    %c0_i32_1 = arith.constant 0 : i32
    return %c0_i32, %c0_i32_0 : i32, i32
  }
  func.func @transform_17(%arg0: i32) -> (i32, i32) {
    %c0_i32 = arith.constant 0 : i32
    %c0_i32_0 = arith.constant 0 : i32
    %c0_i32_1 = arith.constant 0 : i32
    return %c0_i32, %c0_i32_0 : i32, i32
  }
}

</mosaic_0001>

<bundles_post_ra>
// kernel: tpu_custom_call.1
= control target key start
LH: loop header
LB: loop body
LE: loop exit
PB: predicated region body
PF: predicated region fallthrough
CT: control target
= control target key end

     0   :  { %s3769_s0 = inlined_call_operand.vmem [shape: f32[8,128], index: 0, kind: input, shape index: {}]   ;;  %s3770_s1 = inlined_call_operand.vmem [shape: f32[16,128], index: 1, kind: input, shape index: {}]   ;;  %s3771_s2 = inlined_call_operand.vmem [shape: f32[32,8], index: 2, kind: input, shape index: {}]   ;;  %s3772_s3 = inlined_call_operand.vmem [shape: f32[8,1], index: 3, kind: input, shape index: {}]   ;;  %s3773_s4 = inlined_call_operand.hbm [shape: f32[2,384,128], index: 4, kind: input, shape index: {}]   ;;  %s3774_s5 = inlined_call_operand.vmem [shape: f32[2,1,128], index: 5, kind: input, shape index: {}]   ;;  %s3775_s6 = inlined_call_operand.hbm [shape: f32[2,128,128], index: 6, kind: input, shape index: {}]   ;;  %s3776_s7 = inlined_call_operand.vmem [shape: f32[2,1,128], index: 7, kind: input, shape index: {}]   ;;  %s3777_s8 = inlined_call_operand.hbm [shape: f32[2,128,128], index: 8, kind: input, shape index: {}]   ;;  %s3778_s9 = inlined_call_operand.vmem [shape: f32[2,1,128], index: 9, kind: input, shape index: {}]   ;;  %s3779_s10 = inlined_call_operand.hbm [shape: f32[2,128,128], index: 10, kind: input, shape index: {}]   ;;  %s3780_s11 = inlined_call_operand.vmem [shape: f32[2,1,128], index: 11, kind: input, shape index: {}]   ;;  %s3781_s12 = inlined_call_operand.hbm [shape: f32[2,128,128], index: 12, kind: input, shape index: {}]   ;;  %s3782_s13 = inlined_call_operand.vmem [shape: f32[2,1,128], index: 13, kind: input, shape index: {}]   ;;  %s3783_s14 = inlined_call_operand.hbm [shape: f32[2,128,128], index: 14, kind: input, shape index: {}]   ;;  %s3784_s15 = inlined_call_operand.vmem [shape: f32[2,1,128], index: 15, kind: input, shape index: {}]   ;;  %s3785_s16 = inlined_call_operand.hbm [shape: f32[8,128], index: 16, kind: output, shape index: {0}]   ;;  %s3786_s17 = inlined_call_operand.hbm [shape: f32[16,128], index: 17, kind: output, shape index: {1}]  }
   0x1   :  { %3800 = sst [smem:[#allocation27_spill]] %s3769_s0 }
   0x2   :  { %3801 = sst [smem:[#allocation28_spill]] %s3770_s1 }
   0x3   :  { %3802 = sst [smem:[#allocation29_spill]] %s3771_s2 }
   0x4   :  { %3803 = sst [smem:[#allocation30_spill]] %s3772_s3 }
   0x5   :  { %3804 = sst [smem:[#allocation31_spill]] %s3773_s4 }
   0x6   :  { %3805 = sst [smem:[#allocation32_spill]] %s3775_s6 }
   0x7   :  { %3806 = sst [smem:[#allocation33_spill]] %s3777_s8 }
   0x8   :  { %3807 = sst [smem:[#allocation34_spill]] %s3778_s9 }
   0x9   :  { %3808 = sst [smem:[#allocation35_spill]] %s3779_s10 }
   0xa   :  { %3809 = sst [smem:[#allocation36_spill]] %s3780_s11 }
   0xb   :  { %3810 = sst [smem:[#allocation37_spill]] %s3781_s12 }
   0xc   :  { %3811 = sst [smem:[#allocation38_spill]] %s3782_s13 }
   0xd   :  { %3812 = sst [smem:[#allocation39_spill]] %s3784_s15 }
   0xe   :  { %3813 = sst [smem:[#allocation40_spill]] %s3785_s16 }
   0xf   :  { %3814 = sst [smem:[#allocation41_spill]] %s3786_s17 }
  0x10   :  { %23 = vsyncpa [#allocation5], 0 }
  0x11   :  { %25 = vsyncpa [#allocation5 + $0x1], 0 }
  0x12   :  { %26 = vsyncpa [#allocation8], 0 }
  0x13   :  { %28 = vsyncpa [#allocation8 + $0x1], 0 }
  0x14   :  { %29 = vsyncpa [#allocation11], 0 }
  0x15   :  { %31 = vsyncpa [#allocation11 + $0x1], 0 }
  0x16   :  { %32 = vsyncpa [#allocation14], 0 }
  0x17   :  { %34 = vsyncpa [#allocation14 + $0x1], 0 }
  0x18   :  { %35 = vsyncpa [#allocation6], 0 }
  0x19   :  { %36 = vsyncpa [#allocation17], 0  ;;  %s3140_s24 = smov 0   ;;  %s3142_s25 = smov 0  }
  0x1a   :  { %s3144_s26 = smov 0   ;;  %s3146_s27 = smov 0  }
  0x1b LB: > { %3815 = sst [smem:[#allocation24_spill]] %s3028_s26  ;;  %s3159_s28 = sadd.s32 4294967295, %s3032_s27   ;;  %s3032_s27 = sphi %s3146_s27, %s3852_s27   ;;  %s3028_s26 = sphi %s3144_s26, %s3854_s26   ;;  %s3024_s25 = sphi %s3142_s25, %s3856_s25   ;;  %s3020_s24 = sphi %s3140_s24, %s3855_s24  }
  0x1c   : > { %s3162_s29 = sadd.s32 1, %s3032_s27   ;;  %s133_s30 = sadd.s32 1, %s3028_s26 }
  0x1d   : > { %3816 = sst [smem:[#allocation25_spill]] %s3162_s29  ;;  %s130_s0 = ssub.s32 %s3032_s27, %s3162_s29 }
  0x1e   : > { %p131_p0 = scmp.eq.s32.totalorder %s130_s0, 0  ;;  %p140_p1 = scmp.ne.s32.totalorder %s3028_s26, %s3024_s25 }
  0x1f   : > { %p141_p2 = scmp.eq.s32.totalorder %s3032_s27, 0  ;;  %p146_p3 = scmp.ne.s32.totalorder %s3024_s25, %s3020_s24 }
  0x20   : > { %s3172_s18 = scalar_select %p131_p0, %s3028_s26, %s133_s30  }
  0x21   : > { %p142_p4 = por %p141_p2, %p140_p1  ;;  %p147_p5 = scmp.eq.s32.totalorder %s3159_s28, 0 }
  0x22   : > { %3817 = sst [smem:[#allocation26_spill]] %s3172_s18  ;;  %p2697_p6 = scmp.lt.s32.totalorder %s3032_s27, 2 }
  0x23   : > { %p3176_p7 = por %p147_p5, %p146_p3  ;;  %s3181_s1 = sand.u32 1, %s3028_s26  }
  0x24   : > { %p3183_p8 = pnand %p2697_p6, %p142_p4  ;;  %s3794_s21 = sand.u32 1, %s3032_s27  }
  0x25   : > { %s3818_s19 = scalar_select %p3176_p7, 1, 0 }
  0x26   : > { %s3189_s22 = sshll.u32 %s3181_s1, 7  ;;  %s3192_s23 = sshll.u32 %s3032_s27, 11 }
  0x27   : > { %s3820_s6 = sld [smem:[#allocation32_spill]]  ;;  %s541_s18 = scalar_lea.vmem [#allocation7], %s3189_s22 }
  0x28   : > { %s548_s26 = sshll.u32 %s541_s18, 4  ;;  %s3207_s29 = scalar_lea.sflag [#allocation8], %s3794_s21  ;;  %s3202_s26 = int_to_ptr.vmem [resolvable:$true] %s548_s26 }
  0x29   : > { %p3213_p12 = pneg %p3183_p8 }
  0x2d   : > { %s3198_s30 = scalar_lea.hbm %s3820_s6, %s3192_s23  ;;  %s2751_s16 = scalar_lea.hbm %s3820_s6, 4096 }
  0x2e   : > { %s2746_s17 = scalar_lea.hbm %s3198_s30, 2048  ;;  %p2752_p1 = scmp.lt.u32.totalorder %s3198_s30, %s3820_s6 }
  0x2f   : > { %p2747_p11 = scmp.ne.s32.totalorder %s3198_s30, %s2746_s17  ;;  %p2753_p2 = scmp.lt.u32.totalorder %s2751_s16, %s2746_s17 }
  0x30   : > { %p2755_p4 = scmp.lt.u32.totalorder %s2746_s17, %s3198_s30 }
  0x31   : > { %p2749_p13 = pnand %p3213_p12, %p2747_p11  ;;  %p2754_p3 = por %p2753_p2, %p2752_p1 }
  0x33   : > { %p2750_p0 = pneg %p2749_p13  ;;  %p2756_p5 = por %p2755_p4, %p2754_p3 }
  0x35   : > { %p2757_p6 = pnand %p2756_p5, %p2750_p0 }
  0x37   : > { %2760 = shalt.err (!%p2757_p6)
}
  0x38   : > { %s2761_s21 = scalar_lea.vmem %s3202_s26, 2048  ;;  %s3034_s0 = smov [#allocation7]  }
  0x39   : > { %p2762_p11 = scmp.ne.s32.totalorder %s3202_s26, %s2761_s21  ;;  %s2766_s18 = sshll.u32 %s3034_s0, 4  ;;  %s2767_s18 = int_to_ptr.vmem [resolvable:$false] %s2766_s18 }
  0x3a   : > { %s2768_s2 = scalar_lea.vmem %s2767_s18, 4096  ;;  %p2769_p10 = scmp.lt.s32.totalorder %s3202_s26, %s2767_s18 }
  0x3b   : > { %p2764_p13 = pnand %p2762_p11, %p3213_p12  ;;  %p2770_p7 = scmp.lt.s32.totalorder %s2768_s2, %s2761_s21 }
  0x3d   : > { %p2765_p9 = pneg %p2764_p13  ;;  %p2771_p1 = por %p2770_p7, %p2769_p10 }
  0x3f   : > { %p2772_p2 = pnand %p2771_p1, %p2765_p9 }
  0x41   : > { %2775 = shalt.err (!%p2772_p2)
}
  0x42   : > { %s3796_s3 = smov 128   ;;  %s3798_s16 = smov 8  }
  0x43   : > { %2684 = dma.hbm_to_vmem [thread:$0]  (!%p3183_p8), %s3198_s30, 2048, %s3202_s26, %s3207_s29, %s3796_s3, %s3796_s3, %s3798_s16  }
  0x44   : > { %p3822_p7 = scmp.lt.s32.totalorder %s3032_s27, 3  ;;  %p3823_p9 = scmp.ge.s32.totalorder %s3032_s27, 1 }
  0x45   : > { %s3825_s10 = sld [smem:[#allocation35_spill]]  ;;  %s595_s2 = scalar_lea.vmem [#allocation10], %s3189_s22 }
  0x46   : > { %p3244_p10 = pnand %p3823_p9, %p3822_p7  ;;  %s602_s6 = sshll.u32 %s595_s2, 4  ;;  %s3255_s6 = int_to_ptr.vmem [resolvable:$true] %s602_s6 }
  0x47   : > { %s2655_s26 = smul.u32 384, %s3181_s1  ;;  %s3826_s30 = sand.u32 1, %s3032_s27  }
  0x48   : > { %s3824_s17 = scalar_select %p3244_p10, 1, 0 }
  0x49   : > { %s3260_s3 = scalar_lea.sflag [#allocation11], %s3826_s30 }
  0x4b   : > { %s3252_s18 = scalar_lea.hbm %s3825_s10, %s3192_s23  ;;  %s2781_s15 = scalar_lea.hbm %s3825_s10, 4096 }
  0x4c   : > { %s2776_s16 = scalar_lea.hbm %s3252_s18, 2048  ;;  %p2782_p5 = scmp.lt.u32.totalorder %s3252_s18, %s3825_s10 }
  0x4d   : > { %p2777_p0 = scmp.ne.s32.totalorder %s3252_s18, %s2776_s16  ;;  %p2783_p6 = scmp.lt.u32.totalorder %s2781_s15, %s2776_s16 }
  0x4e   : > { %p2785_p13 = scmp.lt.u32.totalorder %s2776_s16, %s3252_s18 }
  0x4f   : > { %p2779_p3 = pnand %p2777_p0, %p3213_p12  ;;  %p2784_p11 = por %p2783_p6, %p2782_p5 }
  0x51   : > { %p2780_p4 = pneg %p2779_p3  ;;  %p2786_p1 = por %p2785_p13, %p2784_p11 }
  0x53   : > { %p2787_p2 = pnand %p2786_p1, %p2780_p4 }
  0x55   : > { %2790 = shalt.err (!%p2787_p2)
}
  0x56   : > { %s2791_s2 = scalar_lea.vmem %s3255_s6, 2048  ;;  %s3037_s30 = smov [#allocation10]  }
  0x57   : > { %p2792_p7 = scmp.ne.s32.totalorder %s3255_s6, %s2791_s2  ;;  %s2796_s21 = sshll.u32 %s3037_s30, 4  ;;  %s2797_s21 = int_to_ptr.vmem [resolvable:$false] %s2796_s21 }
  0x58   : > { %s2798_s11 = scalar_lea.vmem %s2797_s21, 4096  ;;  %p2799_p3 = scmp.lt.s32.totalorder %s3255_s6, %s2797_s21 }
  0x59   : > { %p2794_p9 = pnand %p2792_p7, %p3213_p12  ;;  %p2800_p10 = scmp.lt.s32.totalorder %s2798_s11, %s2791_s2 }
  0x5b   : > { %p2795_p0 = pneg %p2794_p9  ;;  %p2801_p5 = por %p2800_p10, %p2799_p3 }
  0x5d   : > { %p2802_p6 = pnand %p2801_p5, %p2795_p0 }
  0x5f   : > { %2805 = shalt.err (!%p2802_p6)
}
  0x60   : > { %s3827_s13 = smov 8   ;;  %s3828_s15 = smov 128  }
  0x61   : > { %2690 = dma.hbm_to_vmem [thread:$0]  (!%p3183_p8), %s3252_s18, 2048, %s3255_s6, %s3260_s3, %s3828_s15, %s3828_s15, %s3827_s13  }
  0x62   : > { %s2656_s16 = smul.u32 6144, %s3032_s27  ;;  %s514_s0 = scalar_lea.vmem [#allocation4], %s2655_s26 }
  0x63   : > { %s521_s2 = sshll.u32 %s514_s0, 4  ;;  %s3829_s4 = sld [smem:[#allocation31_spill]]  ;;  %s3295_s2 = int_to_ptr.vmem [resolvable:$true] %s521_s2 }
  0x64   : > { %s511_s10 = scalar_lea.sflag [#allocation5], %s3181_s1 }
  0x69   : > { %s3293_s11 = scalar_lea.hbm %s3829_s4, %s2656_s16  ;;  %s2811_s18 = scalar_lea.hbm %s3829_s4, 12288 }
  0x6a   : > { %s2806_s9 = scalar_lea.hbm %s3293_s11, 6144  ;;  %p2812_p13 = scmp.lt.u32.totalorder %s3293_s11, %s3829_s4 }
  0x6b   : > { %p2807_p10 = scmp.ne.s32.totalorder %s3293_s11, %s2806_s9  ;;  %p2813_p1 = scmp.lt.u32.totalorder %s2811_s18, %s2806_s9 }
  0x6c   : > { %p2815_p7 = scmp.lt.u32.totalorder %s2806_s9, %s3293_s11 }
  0x6d   : > { %p2809_p4 = pnand %p2807_p10, %p3213_p12  ;;  %p2814_p2 = por %p2813_p1, %p2812_p13 }
  0x6f   : > { %p2810_p11 = pneg %p2809_p4  ;;  %p2816_p9 = por %p2815_p7, %p2814_p2 }
  0x71   : > { %p2817_p0 = pnand %p2816_p9, %p2810_p11 }
  0x73   : > { %2820 = shalt.err (!%p2817_p0)
}
  0x74   : > { %s2821_s16 = scalar_lea.vmem %s3295_s2, 6144  ;;  %s3038_s30 = smov [#allocation4]  }
  0x75   : > { %p2822_p3 = scmp.ne.s32.totalorder %s3295_s2, %s2821_s16  ;;  %s2826_s21 = sshll.u32 %s3038_s30, 4  ;;  %s2827_s21 = int_to_ptr.vmem [resolvable:$false] %s2826_s21 }
  0x76   : > { %s2828_s6 = scalar_lea.vmem %s2827_s21, 12288  ;;  %p2829_p10 = scmp.lt.s32.totalorder %s3295_s2, %s2827_s21 }
  0x77   : > { %p2824_p5 = pnand %p2822_p3, %p3213_p12  ;;  %p2830_p4 = scmp.lt.s32.totalorder %s2828_s6, %s2821_s16 }
  0x79   : > { %p2825_p6 = pneg %p2824_p5  ;;  %p2831_p13 = por %p2830_p4, %p2829_p10 }
  0x7b   : > { %p2832_p1 = pnand %p2831_p13, %p2825_p6 }
  0x7d   : > { %2835 = shalt.err (!%p2832_p1)
}
  0x7e   : > { %2681 = dma.hbm_to_vmem [thread:$0]  (!%p3183_p8), %s3293_s11, 6144, %s3295_s2, %s511_s10, %s3828_s15, %s3828_s15, %s3827_s13  }
  0x7f   : > { %s3830_s8 = sld [smem:[#allocation33_spill]]  ;;  %s568_s26 = scalar_lea.vmem [#allocation9], %s3189_s22 }
  0x80   : > { %s575_s0 = sshll.u32 %s568_s26, 4  ;;  %s3331_s0 = int_to_ptr.vmem [resolvable:$true] %s575_s0 }
  0x85   : > { %s3328_s18 = scalar_lea.hbm %s3830_s8, %s3192_s23  ;;  %s2841_s2 = scalar_lea.hbm %s3830_s8, 4096 }
  0x86   : > { %s2836_s16 = scalar_lea.hbm %s3328_s18, 2048  ;;  %p2842_p9 = scmp.lt.u32.totalorder %s3328_s18, %s3830_s8 }
  0x87   : > { %p2837_p11 = scmp.ne.s32.totalorder %s3328_s18, %s2836_s16  ;;  %p2843_p0 = scmp.lt.u32.totalorder %s2841_s2, %s2836_s16 }
  0x88   : > { %p2845_p5 = scmp.lt.u32.totalorder %s2836_s16, %s3328_s18 }
  0x89   : > { %p2839_p2 = pnand %p2837_p11, %p3213_p12  ;;  %p2844_p3 = por %p2843_p0, %p2842_p9 }
  0x8b   : > { %p2840_p7 = pneg %p2839_p2  ;;  %p2846_p6 = por %p2845_p5, %p2844_p3 }
  0x8d   : > { %p2847_p10 = pnand %p2846_p6, %p2840_p7 }
  0x8f   : > { %2850 = shalt.err (!%p2847_p10)
}
  0x90   : > { %s2851_s6 = scalar_lea.vmem %s3331_s0, 2048  ;;  %s3039_s9 = smov [#allocation9]  }
  0x91   : > { %p2852_p4 = scmp.ne.s32.totalorder %s3331_s0, %s2851_s6  ;;  %s2856_s27 = sshll.u32 %s3039_s9, 4  ;;  %s2857_s27 = int_to_ptr.vmem [resolvable:$false] %s2856_s27 }
  0x92   : > { %s2858_s26 = scalar_lea.vmem %s2857_s27, 4096  ;;  %p2859_p11 = scmp.lt.s32.totalorder %s3331_s0, %s2857_s27 }
  0x93   : > { %p2854_p13 = pnand %p2852_p4, %p3213_p12  ;;  %p2860_p2 = scmp.lt.s32.totalorder %s2858_s26, %s2851_s6 }
  0x95   : > { %p2855_p1 = pneg %p2854_p13  ;;  %p2861_p9 = por %p2860_p2, %p2859_p11 }
  0x97   : > { %p2862_p0 = pnand %p2861_p9, %p2855_p1 }
  0x99   : > { %2865 = shalt.err (!%p2862_p0)
}
  0x9a   : > { %2687 = dma.hbm_to_vmem [thread:$0]  (!%p3183_p8), %s3328_s18, 2048, %s3331_s0, %s3207_s29, %s3828_s15, %s3828_s15, %s3827_s13  }
  0x9b   : > { %s3831_s12 = sld [smem:[#allocation37_spill]]  ;;  %s622_s2 = scalar_lea.vmem [#allocation12], %s3189_s22 }
  0x9c   : > { %s629_s11 = sshll.u32 %s622_s2, 4  ;;  %s3365_s11 = int_to_ptr.vmem [resolvable:$true] %s629_s11 }
  0xa1   : > { %s3362_s10 = scalar_lea.hbm %s3831_s12, %s3192_s23  ;;  %s2871_s18 = scalar_lea.hbm %s3831_s12, 4096 }
  0xa2   : > { %s2866_s21 = scalar_lea.hbm %s3362_s10, 2048  ;;  %p2872_p6 = scmp.lt.u32.totalorder %s3362_s10, %s3831_s12 }
  0xa3   : > { %p2867_p7 = scmp.ne.s32.totalorder %s3362_s10, %s2866_s21  ;;  %p2873_p10 = scmp.lt.u32.totalorder %s2871_s18, %s2866_s21 }
  0xa4   : > { %p2875_p13 = scmp.lt.u32.totalorder %s2866_s21, %s3362_s10 }
  0xa5   : > { %p2869_p3 = pnand %p2867_p7, %p3213_p12  ;;  %p2874_p4 = por %p2873_p10, %p2872_p6 }
  0xa7   : > { %p2870_p5 = pneg %p2869_p3  ;;  %p2876_p1 = por %p2875_p13, %p2874_p4 }
  0xa9   : > { %p2877_p11 = pnand %p2876_p1, %p2870_p5 }
  0xab   : > { %2880 = shalt.err (!%p2877_p11)
}
  0xac   : > { %s2881_s27 = scalar_lea.vmem %s3365_s11, 2048  ;;  %s3040_s26 = smov [#allocation12]  }
  0xad   : > { %p2882_p2 = scmp.ne.s32.totalorder %s3365_s11, %s2881_s27  ;;  %s2886_s16 = sshll.u32 %s3040_s26, 4  ;;  %s2887_s16 = int_to_ptr.vmem [resolvable:$false] %s2886_s16 }
  0xae   : > { %s2888_s30 = scalar_lea.vmem %s2887_s16, 4096  ;;  %p2889_p7 = scmp.lt.s32.totalorder %s3365_s11, %s2887_s16 }
  0xaf   : > { %p2884_p9 = pnand %p2882_p2, %p3213_p12  ;;  %p2890_p3 = scmp.lt.s32.totalorder %s2888_s30, %s2881_s27 }
  0xb1   : > { %p2885_p0 = pneg %p2884_p9  ;;  %p2891_p6 = por %p2890_p3, %p2889_p7 }
  0xb3   : > { %p2892_p10 = pnand %p2891_p6, %p2885_p0 }
  0xb5   : > { %2895 = shalt.err (!%p2892_p10)
}
  0xb6   : > { %2693 = dma.hbm_to_vmem [thread:$0]  (!%p3183_p8), %s3362_s10, 2048, %s3365_s11, %s3260_s3, %s3828_s15, %s3828_s15, %s3827_s13  }
  0xb7   : > { %s3396_s6 = scalar_lea.hbm %s3783_s14, %s3192_s23  ;;  %s649_s29 = scalar_lea.vmem [#allocation13], %s3189_s22 }
  0xb8   : > { %s656_s18 = sshll.u32 %s649_s29, 4  ;;  %s646_s0 = scalar_lea.sflag [#allocation14], %s3181_s1  ;;  %s3399_s18 = int_to_ptr.vmem [resolvable:$true] %s656_s18 }
  0xb9   : > { %s2896_s9 = scalar_lea.hbm %s3396_s6, 2048  ;;  %s2901_s11 = scalar_lea.hbm %s3783_s14, 4096 }
  0xba   : > { %p2897_p5 = scmp.ne.s32.totalorder %s3396_s6, %s2896_s9  ;;  %p2902_p1 = scmp.lt.u32.totalorder %s3396_s6, %s3783_s14 }
  0xbb   : > { %p2903_p11 = scmp.lt.u32.totalorder %s2901_s11, %s2896_s9  ;;  %p2905_p9 = scmp.lt.u32.totalorder %s2896_s9, %s3396_s6 }
  0xbc   : > { %p2899_p4 = pnand %p2897_p5, %p3213_p12 }
  0xbd   : > { %p2904_p2 = por %p2903_p11, %p2902_p1 }
  0xbe   : > { %p2900_p13 = pneg %p2899_p4 }
  0xbf   : > { %p2906_p0 = por %p2905_p9, %p2904_p2 }
  0xc1   : > { %p2907_p7 = pnand %p2906_p0, %p2900_p13 }
  0xc3   : > { %2910 = shalt.err (!%p2907_p7)
}
  0xc4   : > { %s2911_s22 = scalar_lea.vmem %s3399_s18, 2048  ;;  %s3041_s26 = smov [#allocation13]  }
  0xc5   : > { %p2912_p3 = scmp.ne.s32.totalorder %s3399_s18, %s2911_s22  ;;  %s2916_s16 = sshll.u32 %s3041_s26, 4  ;;  %s2917_s16 = int_to_ptr.vmem [resolvable:$false] %s2916_s16 }
  0xc6   : > { %s2918_s30 = scalar_lea.vmem %s2917_s16, 4096  ;;  %p2919_p5 = scmp.lt.s32.totalorder %s3399_s18, %s2917_s16 }
  0xc7   : > { %p2914_p6 = pnand %p2912_p3, %p3213_p12  ;;  %p2920_p4 = scmp.lt.s32.totalorder %s2918_s30, %s2911_s22 }
  0xc9   : > { %p2915_p10 = pneg %p2914_p6  ;;  %p2921_p1 = por %p2920_p4, %p2919_p5 }
  0xcb   : > { %p2922_p11 = pnand %p2921_p1, %p2915_p10 }
  0xcd   : > { %2925 = shalt.err (!%p2922_p11)
}
  0xce   : > { %2696 = dma.hbm_to_vmem [thread:$0]  (!%p3183_p8), %s3396_s6, 2048, %s3399_s18, %s646_s0, %s3828_s15, %s3828_s15, %s3827_s13  }
  0xcf   : > { %p3832_p12 = scmp.ne.s32.totalorder %s3824_s17, 0 }
  0xd0   : > { %s676_s24 = sand.u32 (!%p3832_p12), 1, %s3024_s25   ;;  %p3833_p13 = scmp.ne.s32.totalorder (!%p3832_p12), %s3818_s19, 0 }
  0xd1   : > { %674 = sbr.rel (%p3832_p12) target bundleno = 1648 (0x670), region = 84  ;;  %s677_s21 = scalar_lea.sflag (!%p3832_p12), [#allocation5], %s676_s24 }
  0xd2   : > { %s2657_s2 = smul.u32 (!%p3832_p12), 384, %s676_s24 }
  0xd4   : > { %s3431_s29 = scalar_lea.vmem (!%p3832_p12), [#allocation4], %s2657_s2 }
  0xd8   : > { %2995 = dma.done.wait (%p3833_p13), %s677_s21, 6144  }
  0xd9   : > { %2997 = vsyncadd (%p3833_p13), %s677_s21, 4294961152  ;;  %s685_s1 = sand.u32 1, %s3159_s28   ;;  %s2029_s20 = sshll.u32 %s676_s24, 7 }
  0xda   : > { %s686_s13 = scalar_lea.sflag [#allocation8], %s685_s1  ;;  %s3438_s15 = scalar_lea.vmem [#allocation7], %s2029_s20 }
  0xdb   : > { %2999 = dma.done.wait (%p3833_p13), %s686_s13, 4096  }
  0xdc   : > { %3001 = vsyncadd (%p3833_p13), %s686_s13, 4294963200  ;;  %s3444_s17 = scalar_lea.vmem [#allocation9], %s2029_s20  ;;  %s704_s6 = scalar_lea.sflag [#allocation11], %s685_s1 }
  0xdd   : > { %s3446_s18 = scalar_lea.vmem [#allocation10], %s2029_s20 }
  0xde   : > { %3003 = dma.done.wait (%p3833_p13), %s704_s6, 4096  }
  0xdf   : > { %3005 = vsyncadd (%p3833_p13), %s704_s6, 4294963200  ;;  %s3452_s0 = scalar_lea.vmem [#allocation12], %s2029_s20  ;;  %s722_s9 = scalar_lea.sflag [#allocation14], %s676_s24 }
  0xe0   : > { %s3454_s3 = scalar_lea.vmem [#allocation13], %s2029_s20 }
  0xe1   : > { %3007 = dma.done.wait (%p3833_p13), %s722_s9, 2048  }
  0xe2   : > { %3009 = vsyncadd (%p3833_p13), %s722_s9, 4294965248  ;;  %p814_p8 = scmp.lt.s32.totalorder %s3159_s28, 1  ;;  %s3835_s20 = sld [smem:[#allocation36_spill]] }
  0xe3   : > { %s3836_s11 = sld [smem:[#allocation38_spill]]  ;;  %s3837_s12 = sld [smem:[#allocation39_spill]] }
  0xe4   : > { %s3462_s10 = scalar_select %p814_p8, %s3159_s28, 1 }
  0xe5   : > { %p2034_p2 = scmp.ne.s32.totalorder %s3159_s28, 0 }
  0xe6   : > { %s3838_s19 = sld [smem:[#allocation27_spill]] (!%p2034_p2)  ;;  %s3839_s24 = sld [smem:[#allocation28_spill]] (!%p2034_p2) }
  0xe7   : > { %835 = sbr.rel (%p2034_p2) target bundleno = 239 (0xef), region = 112 }
  0xe8   : > { %s825_s13 = scalar_lea.vmem %s3835_s20, %s3462_s10 }
  0xe9   : > { %s828_s23 = scalar_lea.vmem %s3836_s11, %s3462_s10  ;;  %s831_s27 = scalar_lea.vmem %s3837_s12, %s3462_s10 }
  0xec   : > { %v836_v0 = vld [vmem:[%s3838_s19] sm:$0xff] (!%p2034_p2)  ;;  %s3840_s2 = smov (!%p2034_p2), %s3839_s24 }
  0xed   : > { %v838_v1 = vld [vmem:[%s3839_s24] sm:$0xff] (!%p2034_p2)  ;;  %v839_v2 = vld [vmem:[%s3840_s2 + $0x8] sm:$0xff] (!%p2034_p2)  ;;  %837 = vst [vmem:[#allocation2] sm:$0xff] (!%p2034_p2), %v836_v0 }
  0xee   : > { %840 = vst [vmem:[#allocation3] sm:$0xff] %v838_v1  ;;  %841 = vst [vmem:[#allocation3 + $0x8] sm:$0xff] %v839_v2 }
  0xef PF: > { %s3841_s12 = sld [smem:[#allocation29_spill]]  ;;  %vm849_vm0 = vcmask 64512   ;;  %v963_v7 = vld [vmem:[%s3431_s29 + $0x80] sm:$0xff]  ;;  %v964_v9 = vld [vmem:[%s3431_s29 + $0x88] sm:$0xff]  ;;  %v965_v14 = vld [vmem:[%s3431_s29 + $0x90] sm:$0xff]  ;;  %s3842_s26 = scalar_lea.vmem %s3774_s5, %s3462_s10  ;;  %vm3043_vm1 = vmmov 0  }
  0xf0   : > { %v947_v10 = vld [vmem:[%s3431_s29] sm:$0xff]  ;;  %v948_v11 = vld [vmem:[%s3431_s29 + $0x8] sm:$0xff]  ;;  %v2441_v12 = vpack.c.bf16 %v964_v9, %v963_v7  ;;  %v966_v15 = vld [vmem:[%s3431_s29 + $0x98] sm:$0xff]  ;;  %s3843_s16 = sld [smem:[#allocation30_spill]]  ;;  %s3844_s21 = scalar_lea.vmem %s3776_s7, %s3462_s10  ;;  %vm1486_vm2 = vcmask 261120  }
  0xf1   : > { %v2443_v13 = vpack.c.bf16 %v948_v11, %v947_v10  ;;  %v949_v16 = vld [vmem:[%s3431_s29 + $0x10] sm:$0xff]  ;;  %v2445_v17 = vpack.c.bf16 %v966_v15, %v965_v14  ;;  %v950_v18 = vld [vmem:[%s3431_s29 + $0x18] sm:$0xff]  ;;  %v979_v19 = vld [vmem:[%s3431_s29 + $0x100] sm:$0xff]  ;;  %s3845_s8 = sld [smem:[#allocation34_spill]]  ;;  %p2046_p9 = scmp.ne.s32.totalorder %s3159_s28, 1 }
  0xf2   : > { %v980_v20 = vld [vmem:[%s3431_s29 + $0x108] sm:$0xff]  ;;  %2442 = vmatprep.subr.bf16.mxu1 %v2441_v12  ;;  %v967_v22 = vld [vmem:[%s3431_s29 + $0xa0] sm:$0xff]  ;;  %v2447_v24 = vpack.c.bf16 %v950_v18, %v949_v16  ;;  %v981_v25 = vld [vmem:[%s3431_s29 + $0x110] sm:$0xff] }
  0xf3   : > { %v2473_v21 = vpack.c.bf16 %v980_v20, %v979_v19  ;;  %v968_v23 = vld [vmem:[%s3431_s29 + $0xa8] sm:$0xff]  ;;  %2444 = vmatpush3.bf16.msra.mxu1 %v2443_v13  ;;  %v982_v26 = vld [vmem:[%s3431_s29 + $0x118] sm:$0xff]  ;;  %v951_v28 = vld [vmem:[%s3431_s29 + $0x20] sm:$0xff] }
  0xf4   : > { %2446 = vmatprep.subr.bf16.mxu1 %v2445_v17  ;;  %v2449_v27 = vpack.c.bf16 %v968_v23, %v967_v22  ;;  %v952_v29 = vld [vmem:[%s3431_s29 + $0x28] sm:$0xff]  ;;  %v2477_v30 = vpack.c.bf16 %v982_v26, %v981_v25  ;;  %v969_v31 = vld [vmem:[%s3431_s29 + $0xb0] sm:$0xff]  ;;  %v970_v32 = vld [vmem:[%s3431_s29 + $0xb8] sm:$0xff] }
  0xf5   : > { %v842_v3 = vld [vmem:[#allocation2] sm:$0xff]  ;;  %v846_v5 = vld [vmem:[%s3841_s12 + $0x8] sm:$0xff]  ;;  %v847_v6 = vld [vmem:[%s3841_s12 + $0x10] sm:$0xff]  ;;  %v2451_v35 = vpack.c.bf16 %v952_v29, %v951_v28  ;;  %v2453_v38 = vpack.c.bf16 %v970_v32, %v969_v31 }
  0xf6   : > { %v845_v4 = vld [vmem:[%s3841_s12] sm:$0xff]  ;;  %2212 = vmatprep.subr.mxu0 %v842_v3  ;;  %v848_v8 = vld [vmem:[%s3841_s12 + $0x18] sm:$0xff]  ;;  %v953_v36 = vld [vmem:[%s3431_s29 + $0x30] sm:$0xff] }
  0xf7   : > { %2214 = vmatprep.mubr.msk.f32.mxu0 %vm849_vm0, %v845_v4  ;;  %2213 = vmatpush3.msra.mxu0 %v842_v3  ;;  %v983_v33 = vld [vmem:[%s3431_s29 + $0x120] sm:$0xff]  ;;  %v984_v34 = vld [vmem:[%s3431_s29 + $0x128] sm:$0xff]  ;;  %v954_v39 = vld [vmem:[%s3431_s29 + $0x38] sm:$0xff]  ;;  %s3846_s19 = scalar_lea.vmem %s3845_s8, %s3462_s10 }
  0xf8   : > { %1454 = vxpose.xlu0.b32.start [1/4] (short) (narrow) %v845_v4, 8  ;;  %2215 = vmatmul.mubr.msk.f32.vlgmr.msra.gmra.mrb[0].mxu0 %vm849_vm0, %v846_v5  ;;  %v2481_v37 = vpack.c.bf16 %v984_v34, %v983_v33  ;;  %v985_v40 = vld [vmem:[%s3431_s29 + $0x130] sm:$0xff]  ;;  %v986_v41 = vld [vmem:[%s3431_s29 + $0x138] sm:$0xff]  ;;  %v971_v42 = vld [vmem:[%s3431_s29 + $0xc0] sm:$0xff]  ;;  %v2455_v44 = vpack.c.bf16 %v954_v39, %v953_v36 }
  0xf9   : > { %2217 = vmatprep.mubr.msk.f32.mxu0 %vm849_vm0, %v847_v6  ;;  %2474 = vmatprep.subr.bf16.mxu0 %v2473_v21  ;;  %v972_v43 = vld [vmem:[%s3431_s29 + $0xc8] sm:$0xff]  ;;  %v955_v45 = vld [vmem:[%s3431_s29 + $0x40] sm:$0xff]  ;;  %v2485_v46 = vpack.c.bf16 %v986_v41, %v985_v40  ;;  %v973_v51 = vld [vmem:[%s3431_s29 + $0xd0] sm:$0xff] }
  0xfa   : > { %2476 = vmatpush3.bf16.msra.mxu0 %v2473_v21  ;;  %2448 = vmatpush3.bf16.msra.mxu1 %v2447_v24  ;;  %v2457_v47 = vpack.c.bf16 %v972_v43, %v971_v42  ;;  %v956_v48 = vld [vmem:[%s3431_s29 + $0x48] sm:$0xff]  ;;  %v987_v49 = vld [vmem:[%s3431_s29 + $0x140] sm:$0xff]  ;;  %v974_v52 = vld [vmem:[%s3431_s29 + $0xd8] sm:$0xff] }
  0xfb   : > { %2478 = vmatprep.subr.bf16.mxu0 %v2477_v30  ;;  %2450 = vmatprep.subr.bf16.mxu1 %v2449_v27  ;;  %v988_v50 = vld [vmem:[%s3431_s29 + $0x148] sm:$0xff]  ;;  %v2459_v53 = vpack.c.bf16 %v956_v48, %v955_v45  ;;  %v957_v54 = vld [vmem:[%s3431_s29 + $0x50] sm:$0xff]  ;;  %v2461_v56 = vpack.c.bf16 %v974_v52, %v973_v51  ;;  %v958_v57 = vld [vmem:[%s3431_s29 + $0x58] sm:$0xff] }
  0xfc   : > { %1455 = vxpose.xlu0.b32.cont [2/4] (short) (narrow) %v846_v5, 8  ;;  %2218 = vmatmul.mubr.msk.f32.gmra.mrb[2].mxu0 %vm849_vm0, %v848_v8  ;;  %v2489_v55 = vpack.c.bf16 %v988_v50, %v987_v49  ;;  %v989_v58 = vld [vmem:[%s3431_s29 + $0x150] sm:$0xff]  ;;  %v990_v59 = vld [vmem:[%s3431_s29 + $0x158] sm:$0xff]  ;;  %v975_v60 = vld [vmem:[%s3431_s29 + $0xe0] sm:$0xff]  ;;  %v2463_v62 = vpack.c.bf16 %v958_v57, %v957_v54 }
  0xfd   : > { %v976_v61 = vld [vmem:[%s3431_s29 + $0xe8] sm:$0xff]  ;;  %v959_v63 = vld [vmem:[%s3431_s29 + $0x60] sm:$0xff]  ;;  %v2493_v0 = vpack.c.bf16 %v990_v59, %v989_v58  ;;  %v977_v5 = vld [vmem:[%s3431_s29 + $0xf0] sm:$0xff] }
  0xfe   : > { %2480 = vmatpush3.bf16.msra.mxu0 %v2477_v30  ;;  %2452 = vmatpush3.bf16.msra.mxu1 %v2451_v35  ;;  %v2465_v1 = vpack.c.bf16 %v976_v61, %v975_v60  ;;  %v960_v2 = vld [vmem:[%s3431_s29 + $0x68] sm:$0xff]  ;;  %v991_v3 = vld [vmem:[%s3431_s29 + $0x160] sm:$0xff]  ;;  %v961_v10 = vld [vmem:[%s3431_s29 + $0x70] sm:$0xff] }
  0xff   : > { %2482 = vmatprep.subr.bf16.mxu0 %v2481_v37  ;;  %2454 = vmatprep.subr.bf16.mxu1 %v2453_v38  ;;  %v992_v4 = vld [vmem:[%s3431_s29 + $0x168] sm:$0xff]  ;;  %v2467_v7 = vpack.c.bf16 %v960_v2, %v959_v63  ;;  %v962_v11 = vld [vmem:[%s3431_s29 + $0x78] sm:$0xff]  ;;  %v843_v13 = vld [vmem:[#allocation3] sm:$0xff] }
 0x100   : > { %1456 = vxpose.xlu0.b32.cont [3/4] (short) (narrow) %v847_v6, 8  ;;  %v978_v6 = vld [vmem:[%s3431_s29 + $0xf8] sm:$0xff]  ;;  %v2471_v12 = vpack.c.bf16 %v962_v11, %v961_v10  ;;  %v993_v14 = vld [vmem:[%s3431_s29 + $0x170] sm:$0xff]  ;;  %1066 = vmatprep.mubr.f32.mxu1 %v843_v13  ;;  %v1154_v17 = vld [vmem:[%s3438_s15] sm:$0xff] }
 0x101   : > { %v2469_v9 = vpack.c.bf16 %v978_v6, %v977_v5  ;;  %v994_v15 = vld [vmem:[%s3431_s29 + $0x178] sm:$0xff]  ;;  %v1155_v18 = vld [vmem:[%s3438_s15 + $0x8] sm:$0xff]  ;;  %v1254_v19 = vld [vmem:[%s3444_s17] sm:$0xff] }
 0x102   : > { %2484 = vmatpush3.bf16.msra.mxu0 %v2481_v37  ;;  %2456 = vmatpush3.bf16.msra.mxu1 %v2455_v44  ;;  %v2501_v16 = vpack.c.bf16 %v994_v15, %v993_v14  ;;  %v2505_v20 = vpack.c.bf16 %v1155_v18, %v1154_v17  ;;  %v1255_v21 = vld [vmem:[%s3444_s17 + $0x8] sm:$0xff]  ;;  %v1156_v23 = vld [vmem:[%s3438_s15 + $0x10] sm:$0xff]  ;;  %v1157_v24 = vld [vmem:[%s3438_s15 + $0x18] sm:$0xff] }
 0x103   : > { %2486 = vmatprep.subr.bf16.mxu0 %v2485_v46  ;;  %2458 = vmatprep.subr.bf16.mxu1 %v2457_v47  ;;  %v2537_v22 = vpack.c.bf16 %v1255_v21, %v1254_v19  ;;  %v844_v26 = vld [vmem:[#allocation3 + $0x8] sm:$0xff]  ;;  %v2509_v27 = vpack.c.bf16 %v1157_v24, %v1156_v23  ;;  %v1158_v29 = vld [vmem:[%s3438_s15 + $0x20] sm:$0xff]  ;;  %v1159_v30 = vld [vmem:[%s3438_s15 + $0x28] sm:$0xff] }
 0x104   : > { %1457 = vxpose.xlu0.b32.end [4/4] (short) (narrow) %v848_v8, 8  ;;  %v2497_v8 = vpack.c.bf16 %v992_v4, %v991_v3  ;;  %v1256_v31 = vld [vmem:[%s3444_s17 + $0x10] sm:$0xff]  ;;  %v1257_v32 = vld [vmem:[%s3444_s17 + $0x18] sm:$0xff]  ;;  %v2513_v34 = vpack.c.bf16 %v1159_v30, %v1158_v29  ;;  %v1258_v39 = vld [vmem:[%s3444_s17 + $0x20] sm:$0xff] }
 0x105   : > { %v2541_v36 = vpack.c.bf16 %v1257_v32, %v1256_v31  ;;  %v1160_v37 = vld [vmem:[%s3438_s15 + $0x30] sm:$0xff]  ;;  %v1161_v38 = vld [vmem:[%s3438_s15 + $0x38] sm:$0xff]  ;;  %v1259_v40 = vld [vmem:[%s3444_s17 + $0x28] sm:$0xff] }
 0x106   : > { %2488 = vmatpush3.bf16.msra.mxu0 %v2485_v46  ;;  %2460 = vmatpush3.bf16.msra.mxu1 %v2459_v53  ;;  %v2517_v41 = vpack.c.bf16 %v1161_v38, %v1160_v37  ;;  %v2545_v42 = vpack.c.bf16 %v1259_v40, %v1258_v39  ;;  %v1162_v43 = vld [vmem:[%s3438_s15 + $0x40] sm:$0xff]  ;;  %v1163_v44 = vld [vmem:[%s3438_s15 + $0x48] sm:$0xff]  ;;  %v1260_v45 = vld [vmem:[%s3444_s17 + $0x30] sm:$0xff] }
 0x107   : > { %2490 = vmatprep.subr.bf16.mxu0 %v2489_v55  ;;  %2462 = vmatprep.subr.bf16.mxu1 %v2461_v56  ;;  %v1261_v46 = vld [vmem:[%s3444_s17 + $0x38] sm:$0xff]  ;;  %v2521_v47 = vpack.c.bf16 %v1163_v44, %v1162_v43  ;;  %v1262_v49 = vld [vmem:[%s3444_s17 + $0x40] sm:$0xff]  ;;  %v1263_v50 = vld [vmem:[%s3444_s17 + $0x48] sm:$0xff] }
 0x108   : > { %v2549_v48 = vpack.c.bf16 %v1261_v46, %v1260_v45  ;;  %v2553_v51 = vpack.c.bf16 %v1263_v50, %v1262_v49  ;;  %v1164_v52 = vld [vmem:[%s3438_s15 + $0x50] sm:$0xff]  ;;  %v1165_v53 = vld [vmem:[%s3438_s15 + $0x58] sm:$0xff]  ;;  %v1166_v58 = vld [vmem:[%s3438_s15 + $0x60] sm:$0xff]  ;;  %v3042_v45 = vmov 0.0|0.0   ;;  %v3044_v46 = vmov 0.0  }
 0x109   : > { %v2525_v54 = vpack.c.bf16 %v1165_v53, %v1164_v52  ;;  %v1265_v56 = vld [vmem:[%s3444_s17 + $0x58] sm:$0xff]  ;;  %v1167_v59 = vld [vmem:[%s3438_s15 + $0x68] sm:$0xff]  ;;  %v1266_v61 = vld [vmem:[%s3444_s17 + $0x60] sm:$0xff] }
 0x10a   : > { %2492 = vmatpush3.bf16.msra.mxu0 %v2489_v55  ;;  %2464 = vmatpush3.bf16.msra.mxu1 %v2463_v62  ;;  %v1264_v55 = vld [vmem:[%s3444_s17 + $0x50] sm:$0xff]  ;;  %v2529_v60 = vpack.c.bf16 %v1167_v59, %v1166_v58  ;;  %v1267_v62 = vld [vmem:[%s3444_s17 + $0x68] sm:$0xff]  ;;  %v1269_v4 = vld [vmem:[%s3444_s17 + $0x78] sm:$0xff] }
 0x10b   : > { %2494 = vmatprep.subr.bf16.mxu0 %v2493_v0  ;;  %2466 = vmatprep.subr.bf16.mxu1 %v2465_v1  ;;  %v2557_v57 = vpack.c.bf16 %v1265_v56, %v1264_v55  ;;  %v2561_v63 = vpack.c.bf16 %v1267_v62, %v1266_v61  ;;  %v1169_v1 = vld [vmem:[%s3438_s15 + $0x78] sm:$0xff]  ;;  %v1268_v3 = vld [vmem:[%s3444_s17 + $0x70] sm:$0xff]  ;;  %v1354_v6 = vld [vmem:[%s3446_s18] sm:$0xff] }
 0x10c   : > { %v2565_v5 = vpack.c.bf16 %v1269_v4, %v1268_v3  ;;  %v2039_v11 = vld [vmem:[%s3842_s26] ss:$0 sm:$0xff]  ;;  %v1357_v23 = vld [vmem:[%s3446_s18 + $0x18] sm:$0xff]  ;;  %v1360_v30 = vld [vmem:[%s3446_s18 + $0x30] sm:$0xff] }
 0x10d   : > { %v1361_v31 = vld [vmem:[%s3446_s18 + $0x38] sm:$0xff]  ;;  %v1366_v39 = vld [vmem:[%s3446_s18 + $0x60] sm:$0xff]  ;;  %v1367_v40 = vld [vmem:[%s3446_s18 + $0x68] sm:$0xff] }
 0x10e   : > { %2496 = vmatpush3.bf16.msra.mxu0 %v2493_v0  ;;  %2468 = vmatpush3.bf16.msra.mxu1 %v2467_v7  ;;  %v1168_v0 = vld [vmem:[%s3438_s15 + $0x70] sm:$0xff]  ;;  %v1355_v7 = vld [vmem:[%s3446_s18 + $0x8] sm:$0xff]  ;;  %v2581_v32 = vpack.c.bf16 %v1361_v31, %v1360_v30  ;;  %v1365_v37 = vld [vmem:[%s3446_s18 + $0x58] sm:$0xff] }
 0x10f   : > { %2498 = vmatprep.subr.bf16.mxu0 %v2497_v8  ;;  %2470 = vmatprep.subr.bf16.mxu1 %v2469_v9  ;;  %v2533_v2 = vpack.c.bf16 %v1169_v1, %v1168_v0  ;;  %v1369_v43 = vld [vmem:[%s3446_s18 + $0x78] sm:$0xff]  ;;  %v2040_v49 = vld [vmem:[%s3844_s21] ss:$0 sm:$0xff]  ;;  %v1581_v30 = vld [vmem:[%s3452_s0 + $0x70] sm:$0xff] }
 0x110   : > { %v2041_v50 = vld [vmem:[%s3846_s19] ss:$0 sm:$0xff]  ;;  %v1582_v31 = vld [vmem:[%s3452_s0 + $0x78] sm:$0xff] }
 0x111   : > { %v2042_v0 = vld [vmem:[%s825_s13] ss:$0 sm:$0xff] }
 0x112   : > { %2500 = vmatpush3.bf16.msra.mxu0 %v2497_v8  ;;  %2472 = vmatpush3.bf16.msra.mxu1 %v2471_v12  ;;  %v2569_v8 = vpack.c.bf16 %v1355_v7, %v1354_v6  ;;  %v1567_v7 = vld [vmem:[%s3452_s0] sm:$0xff] }
 0x113   : > { %2502 = vmatprep.subr.bf16.mxu0 %v2501_v16  ;;  %2506 = vmatprep.subr.bf16.mxu1 %v2505_v20 }
 0x116   : > { %2504 = vmatpush3.bf16.msra.mxu0 %v2501_v16 }
 0x117   : > { %2538 = vmatprep.subr.bf16.mxu0 %v2537_v22 }
 0x1cb   : > { %v2216_v25 = vpop.f32.mrb[0].mxu0 }
 0x1cc   : > { %v928_v28 = vpop.f32.mrb[1].mxu0 }
 0x1cd   : > { %1067 = vmatmul.mubr.f32.vlgmr.msra.gmra.mrb[0].mxu1 %v928_v28  ;;  %v1359_v28 = vld [vmem:[%s3446_s18 + $0x28] sm:$0xff] }
 0x1ce   : > { %1071 = vmatprep.mubr.f32.mxu1 %v844_v26  ;;  %2508 = vmatpush3.bf16.msra.mxu1 %v2505_v20 }
 0x1cf   : > { %v2219_v33 = vpop.f32.mrb[2].mxu0  ;;  %2510 = vmatprep.subr.bf16.mxu1 %v2509_v27 }
 0x1d0   : > { %v938_v35 = vpop.f32.mrb[3].mxu0 }
 0x1d1   : > { %1072 = vmatmul.mubr.f32.gmra.mrb[2].mxu1 %v2216_v25  ;;  %2252 = vmatprep.mubr.f32.mxu0 %v938_v35 }
 0x1d2   : > { %2253 = vmatmul.mubr.f32.vlgmr.msra.gmra.mrb[4].mxu0 %v2219_v33  ;;  %2512 = vmatpush3.bf16.msra.mxu1 %v2509_v27  ;;  %v1358_v27 = vld [vmem:[%s3446_s18 + $0x20] sm:$0xff] }
 0x1d3   : > { %2540 = vmatpush3.bf16.msra.mxu0 %v2537_v22  ;;  %2514 = vmatprep.subr.bf16.mxu1 %v2513_v34  ;;  %v1356_v22 = vld [vmem:[%s3446_s18 + $0x10] sm:$0xff]  ;;  %v2577_v29 = vpack.c.bf16 %v1359_v28, %v1358_v27  ;;  %v1362_v33 = vld [vmem:[%s3446_s18 + $0x40] sm:$0xff]  ;;  %v1580_v28 = vld [vmem:[%s3452_s0 + $0x68] sm:$0xff] }
 0x1d4   : > { %2542 = vmatprep.subr.bf16.mxu0 %v2541_v36  ;;  %v2573_v26 = vpack.c.bf16 %v1357_v23, %v1356_v22  ;;  %v1576_v22 = vld [vmem:[%s3452_s0 + $0x48] sm:$0xff]  ;;  %v1579_v27 = vld [vmem:[%s3452_s0 + $0x60] sm:$0xff] }
 0x1d6   : > { %2516 = vmatpush3.bf16.msra.mxu1 %v2513_v34  ;;  %v1363_v34 = vld [vmem:[%s3446_s18 + $0x48] sm:$0xff] }
 0x1d7   : > { %2544 = vmatpush3.bf16.msra.mxu0 %v2541_v36  ;;  %2518 = vmatprep.subr.bf16.mxu1 %v2517_v41  ;;  %v2585_v35 = vpack.c.bf16 %v1363_v34, %v1362_v33  ;;  %v1364_v36 = vld [vmem:[%s3446_s18 + $0x50] sm:$0xff]  ;;  %v1661_v33 = vld [vmem:[%s3454_s3] sm:$0xff]  ;;  %v1662_v34 = vld [vmem:[%s3454_s3 + $0x8] sm:$0xff] }
 0x1d8   : > { %2546 = vmatprep.subr.bf16.mxu0 %v2545_v42  ;;  %v2589_v38 = vpack.c.bf16 %v1365_v37, %v1364_v36  ;;  %v2632_v36 = vpack.c.bf16 %v1662_v34, %v1661_v33  ;;  %v1664_v37 = vld [vmem:[%s3454_s3 + $0x18] sm:$0xff] }
 0x1da   : > { %2520 = vmatpush3.bf16.msra.mxu1 %v2517_v41  ;;  %v2593_v41 = vpack.c.bf16 %v1367_v40, %v1366_v39  ;;  %v1665_v39 = vld [vmem:[%s3454_s3 + $0x20] sm:$0xff]  ;;  %v1666_v40 = vld [vmem:[%s3454_s3 + $0x28] sm:$0xff] }
 0x1db   : > { %2548 = vmatpush3.bf16.msra.mxu0 %v2545_v42  ;;  %2522 = vmatprep.subr.bf16.mxu1 %v2521_v47  ;;  %v1368_v42 = vld [vmem:[%s3446_s18 + $0x70] sm:$0xff] }
 0x1dc   : > { %2550 = vmatprep.subr.bf16.mxu0 %v2549_v48  ;;  %v2597_v44 = vpack.c.bf16 %v1369_v43, %v1368_v42  ;;  %v1667_v42 = vld [vmem:[%s3454_s3 + $0x30] sm:$0xff]  ;;  %v1668_v43 = vld [vmem:[%s3454_s3 + $0x38] sm:$0xff] }
 0x1de   : > { %2524 = vmatpush3.bf16.msra.mxu1 %v2521_v47  ;;  %v1560_v47 = vld [vmem:[%s3843_s16] sm:$0xff] }
 0x1df   : > { %2552 = vmatpush3.bf16.msra.mxu0 %v2549_v48  ;;  %2526 = vmatprep.subr.bf16.mxu1 %v2525_v54  ;;  %v3045_v48 = vmov 0  }
 0x1e0   : > { %2554 = vmatprep.subr.bf16.mxu0 %v2553_v51  ;;  %2744 = vset.pattern.permute.xlu1 %v3045_v48 }
 0x1e1   : > { %2745 = vset.pattern.permute.xlu0 %v3045_v48  ;;  %1563 = vperm.xlu1 %2744, %v1560_v47   ;;  %v1670_v47 = vld [vmem:[%s3454_s3 + $0x48] sm:$0xff] }
 0x1e2   : > { %2528 = vmatpush3.bf16.msra.mxu1 %v2525_v54 }
 0x1e3   : > { %2556 = vmatpush3.bf16.msra.mxu0 %v2553_v51  ;;  %2530 = vmatprep.subr.bf16.mxu1 %v2529_v60 }
 0x1e4   : > { %2558 = vmatprep.subr.bf16.mxu0 %v2557_v57 }
 0x1e6   : > { %2532 = vmatpush3.bf16.msra.mxu1 %v2529_v60 }
 0x1e7   : > { %2560 = vmatpush3.bf16.msra.mxu0 %v2557_v57  ;;  %2534 = vmatprep.subr.bf16.mxu1 %v2533_v2 }
 0x1e8   : > { %2562 = vmatprep.subr.bf16.mxu0 %v2561_v63 }
 0x1ea   : > { %2536 = vmatpush3.bf16.msra.mxu1 %v2533_v2 }
 0x1eb   : > { %2564 = vmatpush3.bf16.msra.mxu0 %v2561_v63  ;;  %2570 = vmatprep.subr.bf16.mxu1 %v2569_v8 }
 0x1ec   : > { %2566 = vmatprep.subr.bf16.mxu0 %v2565_v5 }
 0x1ef   : > { %2568 = vmatpush3.bf16.msra.mxu0 %v2565_v5 }
 0x1f0   : > { %2601 = vmatprep.subr.bf16.mxu0 %v3042_v45 }
 0x2a0   : > { %v2095_v9 = vpop.f32.mrb[0].mxu1 }
 0x2a1   : > { %v2096_v10 = vpop.f32.mrb[1].mxu1 }
 0x2a2   : > { %v2097_v12 = vadd.f32 %v2096_v10, %v2095_v9  ;;  %v1470_v10 = vpop.trf.xlu0 }
 0x2a4   : > { %v2098_v13 = vpop.f32.mrb[2].mxu1  ;;  %v1069_v14 = vadd.f32 %v2097_v12, %v2039_v11  ;;  %v1569_v12 = vld [vmem:[%s3452_s0 + $0x10] sm:$0xff] }
 0x2a5   : > { %v2099_v15 = vpop.f32.mrb[3].mxu1  ;;  %v2254_v16 = vpop.f32.mrb[4].mxu0 }
 0x2a6   : > { %v2100_v17 = vadd.f32 %v2099_v15, %v2098_v13  ;;  %v1143_v18 = vpop.f32.mrb[5].mxu0  ;;  %v1570_v13 = vld [vmem:[%s3452_s0 + $0x18] sm:$0xff]  ;;  %v1571_v15 = vld [vmem:[%s3452_s0 + $0x20] sm:$0xff] }
 0x2a7   : > { %v1144_v19 = vadd.f32 %v1143_v18, %v1069_v14  ;;  %v2611_v14 = vpack.c.bf16 %v1570_v13, %v1569_v12  ;;  %v1573_v18 = vld [vmem:[%s3452_s0 + $0x30] sm:$0xff] }
 0x2a8   : > { %v1074_v20 = vadd.f32 %v2100_v17, %v2039_v11 }
 0x2a9   : > { %v1152_v21 = vmax.f32 %v1144_v19, 0.0  ;;  %v1574_v19 = vld [vmem:[%s3452_s0 + $0x38] sm:$0xff] }
 0x2aa   : > { %v1149_v24 = vadd.f32 %v2254_v16, %v1074_v20  ;;  %v1572_v16 = vld [vmem:[%s3452_s0 + $0x28] sm:$0xff]  ;;  %v2617_v20 = vpack.c.bf16 %v1574_v19, %v1573_v18 }
 0x2ab   : > { %2287 = vmatprep.mubr.f32.mxu1 %v1152_v21  ;;  %2322 = vmatprep.mubr.f32.mxu0 %v1152_v21  ;;  %v2614_v17 = vpack.c.bf16 %v1572_v16, %v1571_v15 }
 0x2ac   : > { %v1153_v25 = vmax.f32 %v1149_v24, 0.0  ;;  %v1577_v24 = vld [vmem:[%s3452_s0 + $0x50] sm:$0xff] }
 0x2ae   : > { %2288 = vmatmul.mubr.f32.vlgmr.msra.gmra.mrb[4].mxu1 %v1153_v25  ;;  %2323 = vmatmul.mubr.f32.vlgmr.msra.gmra.mrb[6].mxu0 %v1153_v25 }
 0x2af   : > { %2572 = vmatpush3.bf16.msra.mxu1 %v2569_v8  ;;  %2357 = vmatprep.mubr.f32.mxu1 %v1152_v21  ;;  %v1568_v8 = vld [vmem:[%s3452_s0 + $0x8] sm:$0xff]  ;;  %v1575_v21 = vld [vmem:[%s3452_s0 + $0x40] sm:$0xff] }
 0x2b0   : > { %2574 = vmatprep.subr.bf16.mxu1 %v2573_v26  ;;  %2368 = vmatprep.mubr.msk.f32.mxu0 %vm3043_vm1, %v3044_v46  ;;  %v2608_v11 = vpack.c.bf16 %v1568_v8, %v1567_v7  ;;  %v2620_v23 = vpack.c.bf16 %v1576_v22, %v1575_v21 }
 0x2b3   : > { %2576 = vmatpush3.bf16.msra.mxu1 %v2573_v26 }
 0x2b4   : > { %2578 = vmatprep.subr.bf16.mxu1 %v2577_v29 }
 0x2b7   : > { %2580 = vmatpush3.bf16.msra.mxu1 %v2577_v29  ;;  %v2626_v29 = vpack.c.bf16 %v1580_v28, %v1579_v27 }
 0x2b8   : > { %2582 = vmatprep.subr.bf16.mxu1 %v2581_v32 }
 0x2bb   : > { %2584 = vmatpush3.bf16.msra.mxu1 %v2581_v32  ;;  %v2629_v32 = vpack.c.bf16 %v1582_v31, %v1581_v30 }
 0x2bc   : > { %2586 = vmatprep.subr.bf16.mxu1 %v2585_v35 }
 0x2bf   : > { %2588 = vmatpush3.bf16.msra.mxu1 %v2585_v35  ;;  %v1663_v35 = vld [vmem:[%s3454_s3 + $0x10] sm:$0xff] }
 0x2c0   : > { %2590 = vmatprep.subr.bf16.mxu1 %v2589_v38 }
 0x2c3   : > { %2592 = vmatpush3.bf16.msra.mxu1 %v2589_v38  ;;  %v2635_v38 = vpack.c.bf16 %v1664_v37, %v1663_v35 }
 0x2c4   : > { %2594 = vmatprep.subr.bf16.mxu1 %v2593_v41 }
 0x2c7   : > { %2596 = vmatpush3.bf16.msra.mxu1 %v2593_v41  ;;  %v2638_v41 = vpack.c.bf16 %v1666_v40, %v1665_v39 }
 0x2c8   : > { %2598 = vmatprep.subr.bf16.mxu1 %v2597_v44 }
 0x2cb   : > { %2600 = vmatpush3.bf16.msra.mxu1 %v2597_v44  ;;  %v2641_v44 = vpack.c.bf16 %v1668_v43, %v1667_v42 }
 0x2cc   : > { %2631 = vmatprep.subr.bf16.mxu1 %v3042_v45 }
 0x2ce   : > { %2358 = vmatmul.mubr.f32.vlgmr.msra.gmra.mrb[6].mxu1 %v1153_v25  ;;  %v1578_v25 = vld [vmem:[%s3452_s0 + $0x58] sm:$0xff] }
 0x2cf   : > { %2438 = vmatprep.mubr.msk.f32.mxu1 %vm3043_vm1, %v3044_v46  ;;  %v2623_v26 = vpack.c.bf16 %v1578_v25, %v1577_v24  ;;  %2633 = vmatpush3.bf16.msra.mxu1 %v2632_v36 }
 0x2d0   : > { %2634 = vmatprep.subr.bf16.mxu1 %v3042_v45 }
 0x2d3   : > { %2636 = vmatpush3.bf16.msra.mxu1 %v2635_v38 }
 0x2d4   : > { %2637 = vmatprep.subr.bf16.mxu1 %v3042_v45 }
 0x2d7   : > { %2639 = vmatpush3.bf16.msra.mxu1 %v2638_v41 }
 0x2d8   : > { %2640 = vmatprep.subr.bf16.mxu1 %v3042_v45 }
 0x2db   : > { %2642 = vmatpush3.bf16.msra.mxu1 %v2641_v44 }
 0x2dc   : > { %2643 = vmatprep.subr.bf16.mxu1 %v3042_v45 }
 0x381   : > { %v2289_v51 = vpop.f32.mrb[4].mxu1  ;;  %v2324_v52 = vpop.f32.mrb[6].mxu0 }
 0x382   : > { %v1249_v53 = vadd.f32 %v2289_v51, %v2040_v49  ;;  %v3632_v54 = vadd.f32 %v2324_v52, %v2041_v50  ;;  %v1243_v55 = vpop.f32.mrb[5].mxu1  ;;  %v1343_v56 = vpop.f32.mrb[7].mxu0  ;;  %v1673_v52 = vld [vmem:[%s3454_s3 + $0x60] sm:$0xff] }
 0x383   : > { %v1244_v57 = vadd.f32 %v2040_v49, %v1243_v55  ;;  %v3634_v58 = vadd.f32 %v2041_v50, %v1343_v56  ;;  %v1671_v49 = vld [vmem:[%s3454_s3 + $0x50] sm:$0xff]  ;;  %v1672_v50 = vld [vmem:[%s3454_s3 + $0x58] sm:$0xff]  ;;  %v1564_v56 = vpop.permute.xlu1 %1563 }
 0x384   : > { %v1253_v59 = vmax.f32 %v1249_v53, 0.0  ;;  %v1353_v60 = vmax.f32 %v3632_v54, 0.0  ;;  %v2647_v51 = vpack.c.bf16 %v1672_v50, %v1671_v49  ;;  %v1674_v53 = vld [vmem:[%s3454_s3 + $0x68] sm:$0xff] }
 0x385   : > { %v1252_v61 = vmax.f32 %v1244_v57, 0.0  ;;  %v1352_v62 = vmax.f32 %v3634_v58, 0.0  ;;  %v2650_v55 = vpack.c.bf16 %v1674_v53, %v1673_v52 }
 0x386   : > { %1757 = vst [vmem:[#allocation3 + $0x8] sm:$0xff] %v1353_v60  ;;  %1764 = vst [vmem:[#allocation16 + $0x8] sm:$0xff] (!%p2046_p9), %v1353_v60 }
 0x387   : > { %v2602_v63 = vpack.c.bf16 %v1253_v59, %v1252_v61  ;;  %1756 = vst [vmem:[#allocation3] sm:$0xff] %v1352_v62  ;;  %1763 = vst [vmem:[#allocation16] sm:$0xff] (!%p2046_p9), %v1352_v62 }
 0x389   : > { %2603 = vmatpush3.bf16.msra.mxu0 %v2602_v63  ;;  %v1675_v63 = vld [vmem:[%s3454_s3 + $0x70] sm:$0xff] }
 0x38a   : > { %2604 = vmatprep.subr.bf16.mxu0 %v3042_v45 }
 0x3a1   : > { %v2359_v1 = vpop.f32.mrb[6].mxu1 }
 0x3a2   : > { %v1449_v2 = vadd.f32 %v2359_v1, %v2042_v0  ;;  %v1443_v3 = vpop.f32.mrb[7].mxu1 }
 0x3a3   : > { %v1444_v4 = vadd.f32 %v2042_v0, %v1443_v3  ;;  %v1676_v0 = vld [vmem:[%s3454_s3 + $0x78] sm:$0xff] }
 0x3a4   : > { %v1453_v5 = vmax.f32 %v1449_v2, 0.0  ;;  %v2653_v1 = vpack.c.bf16 %v1676_v0, %v1675_v63  ;;  %v2044_v2 = vld [vmem:[%s828_s23] ss:$0 sm:$0xff] }
 0x3a5   : > { %v1452_v6 = vmax.f32 %v1444_v4, 0.0 }
 0x3a7   : > { %v2605_v9 = vpack.c.bf16 %v1453_v5, %v1452_v6 }
 0x3a9   : > { %2606 = vmatpush3.bf16.msra.mxu0 %v2605_v9 }
 0x3aa   : > { %2607 = vmatprep.subr.bf16.mxu0 %v3042_v45 }
 0x3ac   : > { %2369 = vmatmul.mubr.msk.f32.vlgmr.msra.gmra.mrb[8].mxu0 %vm1486_vm2, %v1470_v10 }
 0x3ad   : > { %2609 = vmatpush3.bf16.msra.mxu0 %v2608_v11  ;;  %2403 = vmatprep.mubr.msk.f32.mxu0 %vm3043_vm1, %v3044_v46  ;;  %v1669_v46 = vld [vmem:[%s3454_s3 + $0x40] sm:$0xff] }
 0x3ae   : > { %2610 = vmatprep.subr.bf16.mxu0 %v3042_v45  ;;  %v2644_v48 = vpack.c.bf16 %v1670_v47, %v1669_v46 }
 0x3b0   : > { %2645 = vmatpush3.bf16.msra.mxu1 %v2644_v48 }
 0x3b1   : > { %2612 = vmatpush3.bf16.msra.mxu0 %v2611_v14  ;;  %2646 = vmatprep.subr.bf16.mxu1 %v3042_v45 }
 0x3b2   : > { %2613 = vmatprep.subr.bf16.mxu0 %v3042_v45 }
 0x3b4   : > { %2648 = vmatpush3.bf16.msra.mxu1 %v2647_v51 }
 0x3b5   : > { %2615 = vmatpush3.bf16.msra.mxu0 %v2614_v17  ;;  %2649 = vmatprep.subr.bf16.mxu1 %v3042_v45 }
 0x3b6   : > { %2616 = vmatprep.subr.bf16.mxu0 %v3042_v45 }
 0x3b8   : > { %2651 = vmatpush3.bf16.msra.mxu1 %v2650_v55 }
 0x3b9   : > { %2618 = vmatpush3.bf16.msra.mxu0 %v2617_v20  ;;  %2652 = vmatprep.subr.bf16.mxu1 %v3042_v45 }
 0x3ba   : > { %2619 = vmatprep.subr.bf16.mxu0 %v3042_v45 }
 0x3bc   : > { %2654 = vmatpush3.bf16.msra.mxu1 %v2653_v1 }
 0x3bd   : > { %2621 = vmatpush3.bf16.msra.mxu0 %v2620_v23 }
 0x3be   : > { %2622 = vmatprep.subr.bf16.mxu0 %v3042_v45 }
 0x3c1   : > { %2624 = vmatpush3.bf16.msra.mxu0 %v2623_v26 }
 0x3c2   : > { %2625 = vmatprep.subr.bf16.mxu0 %v3042_v45 }
 0x3c5   : > { %2627 = vmatpush3.bf16.msra.mxu0 %v2626_v29 }
 0x3c6   : > { %2628 = vmatprep.subr.bf16.mxu0 %v3042_v45  ;;  %v2045_v45 = vld [vmem:[%s831_s27] ss:$0 sm:$0xff] }
 0x3c9   : > { %2630 = vmatpush3.bf16.msra.mxu0 %v2629_v32 }
 0x47f   : > { %v1556_v57 = vpop.f32.mrb[8].mxu0 }
 0x480   : > { %v1566_v59 = vmul.f32 %v1564_v56, %v1556_v57  ;;  %v2370_v61 = vpop.f32.mrb[9].mxu0 }
 0x482   : > { %2404 = vmatmul.mubr.f32.vlgmr.msra.gmra.mrb[10].mxu0 %v1566_v59 }
 0x555   : > { %v1656_v3 = vpop.f32.mrb[10].mxu0 }
 0x556   : > { %v1657_v4 = vadd.f32 %v2044_v2, %v1656_v3  ;;  %v2405_v5 = vpop.f32.mrb[11].mxu0 }
 0x558   : > { %v1660_v6 = vmax.f32 %v1657_v4, 0.0 }
 0x55a   : > { %2439 = vmatmul.mubr.f32.vlgmr.msra.gmra.mrb[8].mxu1 %v1660_v6 }
 0x62c   : > { %1761 = sbr.rel (%p2046_p9) target bundleno = 1587 (0x633), region = 116 }
 0x62d   : > { %v1750_v7 = vpop.f32.mrb[8].mxu1 }
 0x62e   : > { %v1751_v8 = vadd.f32 %v2045_v45, %v1750_v7  ;;  %v2440_v9 = vpop.f32.mrb[9].mxu1 }
 0x630   : > { %v1754_v10 = vmax.f32 %v1751_v8, 0.0 }
 0x632   : > { %1755 = vst [vmem:[#allocation2] sm:$0xff] %v1754_v10  ;;  %1762 = vst [vmem:[#allocation15] sm:$0xff] (!%p2046_p9), %v1754_v10 }
 0x633 PF: > { %p2698_p0 = scmp.eq.s32.totalorder %s3159_s28, 1  ;;  %s3046_s3 = smov [#allocation15]  }
 0x634   : > { %s1772_s10 = sshll.u32 %s3046_s3, 4  ;;  %s3047_s27 = smov [#allocation16]   ;;  %s1773_s10 = int_to_ptr.vmem [resolvable:$true] %s1772_s10 }
 0x635   : > { %s1782_s23 = sshll.u32 %s3047_s27, 4  ;;  %s2926_s26 = scalar_lea.vmem %s1773_s10, 128  ;;  %s1783_s23 = int_to_ptr.vmem [resolvable:$true] %s1782_s23 }
 0x636   : > { %p2927_p7 = scmp.ne.s32.totalorder %s1773_s10, %s2926_s26  ;;  %p2933_p10 = scmp.lt.s32.totalorder %s1773_s10, %s1773_s10 }
 0x637   : > { %p2934_p5 = scmp.lt.s32.totalorder %s2926_s26, %s2926_s26 }
 0x638   : > { %p2928_p3 = pnand %p2927_p7, %p2698_p0 }
 0x639   : > { %p2935_p4 = por %p2934_p5, %p2933_p10 }
 0x63a   : > { %p2929_p6 = pneg %p2928_p3 }
 0x63c   : > { %p2936_p1 = pnand %p2935_p4, %p2929_p6 }
 0x63e   : > { %2939 = shalt.err (!%p2936_p1)
}
 0x63f   : > { %s3850_s16 = sld [smem:[#allocation40_spill]] }
 0x645   : > { %s2940_s30 = scalar_lea.hbm %s3850_s16, 128 }
 0x646   : > { %p2941_p11 = scmp.ne.s32.totalorder %s3850_s16, %s2940_s30  ;;  %p2946_p8 = scmp.lt.u32.totalorder %s2940_s30, %s3850_s16 }
 0x648   : > { %p2942_p12 = pnand %p2941_p11, %p2698_p0 }
 0x64a   : > { %p2943_p13 = pneg %p2942_p12 }
 0x64c   : > { %p2948_p2 = pnand %p2946_p8, %p2943_p13 }
 0x64e   : > { %2951 = shalt.err (!%p2948_p2)
}
 0x64f   : > { %2671 = dma.vmem_to_hbm [thread:$0]  (%p2698_p0), %s1773_s10, 128, %s3850_s16, [#allocation6]  }
 0x650   : > { %s2952_s20 = scalar_lea.vmem %s1783_s23, 256  ;;  %p2959_p6 = scmp.lt.s32.totalorder %s1783_s23, %s1783_s23 }
 0x651   : > { %p2953_p9 = scmp.ne.s32.totalorder %s1783_s23, %s2952_s20  ;;  %p2960_p10 = scmp.lt.s32.totalorder %s2952_s20, %s2952_s20 }
 0x653   : > { %p2954_p7 = pnand %p2953_p9, %p2698_p0  ;;  %p2961_p5 = por %p2960_p10, %p2959_p6 }
 0x655   : > { %p2955_p3 = pneg %p2954_p7 }
 0x657   : > { %p2962_p4 = pnand %p2961_p5, %p2955_p3 }
 0x659   : > { %2965 = shalt.err (!%p2962_p4)
}
 0x65a   : > { %s3851_s0 = sld [smem:[#allocation41_spill]] }
 0x660   : > { %s2966_s13 = scalar_lea.hbm %s3851_s0, 256 }
 0x661   : > { %p2967_p1 = scmp.ne.s32.totalorder %s3851_s0, %s2966_s13  ;;  %p2972_p13 = scmp.lt.u32.totalorder %s2966_s13, %s3851_s0 }
 0x663   : > { %p2968_p11 = pnand %p2967_p1, %p2698_p0 }
 0x665   : > { %p2969_p12 = pneg %p2968_p11 }
 0x667   : > { %p2974_p8 = pnand %p2972_p13, %p2969_p12 }
 0x669   : > { %2977 = shalt.err (!%p2974_p8)
}
 0x66a   : > { %s3048_s3 = smov 128   ;;  %s3049_s10 = smov 8  }
 0x66b   : > { %2673 = dma.vmem_to_hbm [thread:$0]  (%p2698_p0), %s1783_s23, 256, %s3851_s0, [#allocation17], %s3048_s3, %s3048_s3, %s3049_s10  }
 0x66c   : > { %3011 = dma.done.wait (%p2698_p0), [#allocation6], 128  }
 0x66d   : > { %3013 = vsyncadd (%p2698_p0), [#allocation6], 4294967168 }
 0x66e   : > { %3015 = dma.done.wait (%p2698_p0), [#allocation17], 256  }
 0x66f   : > { %3017 = vsyncadd (%p2698_p0), [#allocation17], 4294967040 }
 0x670 PF: > { %s3852_s27 = sld [smem:[#allocation25_spill]]  ;;  %s3853_s17 = sld [smem:[#allocation24_spill]] }
 0x671   : > { %s3854_s26 = sld [smem:[#allocation26_spill]]  ;;  %s3855_s24 = smov %s3024_s25 }
 0x676   : > { %p39_p2 = scmp.ge.s32.totalorder %s3852_s27, 4   ;;  %s3856_s25 = smov %s3853_s17 }
 0x678   :  { %41 = sbr.rel (!%p39_p2) target bundleno = 27 (0x1b), region = 216 }
 0x67f   :  { %1802 = vsyncpa [#allocation5], 1 }
 0x680   :  { %1804 = vsyncpa [#allocation5 + $0x1], 1 }
 0x681   :  { %1805 = vsyncpa [#allocation8], 1 }
 0x682   :  { %1807 = vsyncpa [#allocation8 + $0x1], 1 }
 0x683   :  { %1808 = vsyncpa [#allocation11], 1 }
 0x684   :  { %1810 = vsyncpa [#allocation11 + $0x1], 1 }
 0x685   :  { %1811 = vsyncpa [#allocation14], 1 }
 0x686   :  { %1813 = vsyncpa [#allocation14 + $0x1], 1 }
 0x687   :  { %1814 = vsyncpa [#allocation6], 1 }
 0x688   :  { %1816 = vsyncpa [#allocation6 + $0x1], 1 }
 0x689   :  { %1817 = vsyncpa [#allocation17], 1 }

</bundles_post_ra>
